<compile_context>
chip_gen: v7x
topology: tpu7x:2x2x1
jax: 0.10.0
libtpu: 0.0.40
codegen_flags: <defaults>
</compile_context>

<pallas_src>
import jax
import jax.numpy as jnp
from jax import lax
from jax.experimental import pallas as pl
from jax.experimental.pallas import tpu as pltpu


def _round_up(x, m):
    return (x + m - 1) // m * m


# ------------------------------------------------------------------------------ #
# Parameter init (deterministic, native PyTorch (out_features, in_features) layout) #
# ------------------------------------------------------------------------------ #
def _xavier_normal(key, fan_in, fan_out):
    # nn.init.xavier_normal_: std = sqrt(2 / (fan_in + fan_out)); stored (out, in)
    std = (2.0 / (fan_in + fan_out)) ** 0.5
    return std * jax.random.normal(key, (fan_out, fan_in), dtype=jnp.float32)


def init_resnet_params(key, in_num, out_num, block_layers, block_num):
    """Flat [W, b, ...] list; order: in_linear, per block [mlp linears..., jump?], out_linear."""
    L = len(block_layers)
    has_jump = block_layers[0] != block_layers[1]
    n_linears = 1 + block_num * ((L - 1) + (1 if has_jump else 0)) + 1
    keys = iter(jax.random.split(key, n_linears))
    params = []

    def add(fan_in, fan_out):
        params.append(_xavier_normal(next(keys), fan_in, fan_out))
        params.append(jnp.zeros((fan_out,), jnp.float32))

    add(in_num, block_layers[0])
    for _ in range(block_num):
        for l in range(L - 1):
            add(block_layers[l], block_layers[l + 1])
        if has_jump:
            add(block_layers[0], block_layers[1])
    add(block_layers[-1], out_num)
    return params, has_jump


# --------------------------------------------------------------------------- #
# Pack all parameters into two resident buffers with static, 8-aligned offsets #
# --------------------------------------------------------------------------- #
def pack_params_for_kernel(params, block_layers, block_num, has_jump):
    """Fuse [W_first ; W_jump] along output rows, then pack everything.

    Returns (w_all, b_all, offs); offs[k] = (row_offset, out_rows, in_dim) for the k-th
    linear in kernel execution order.  Row offsets are multiples of 8 so in-kernel
    static slices never cross a sublane tile.
    """
    L = len(block_layers)
    n_mlp = L - 1
    idx = 0

    def take():
        nonlocal idx
        w, b = params[idx], params[idx + 1]
        idx += 2
        return w, b

    layers = [take()]                                     # in_linear
    for _ in range(block_num):
        mlp = [take() for _ in range(n_mlp)]
        if has_jump:
            wj, bj = take()
            w0, b0 = mlp[0]
            mlp[0] = (jnp.concatenate([w0, wj], axis=0),   # row-axis concat (out dim)
                      jnp.concatenate([b0, bj], axis=0))
        layers.extend(mlp)
    layers.append(take())                                 # out_linear

    kpad = _round_up(max(w.shape[1] for w, _ in layers), 128)
    offs, w_blocks, b_blocks, rows = [], [], [], 0
    for w, b in layers:
        out_r, in_r = w.shape
        r_pad = _round_up(out_r, 8)
        offs.append((rows, out_r, in_r))
        w_blocks.append(jnp.zeros((r_pad, kpad), jnp.float32).at[:out_r, :in_r].set(w))
        b_blocks.append(jnp.zeros((r_pad, 1), jnp.float32).at[:out_r, 0].set(b))
        rows += r_pad
    return jnp.concatenate(w_blocks, 0), jnp.concatenate(b_blocks, 0), offs


# --------------------------------------------------------------- #
# Pallas kernel: the entire ResNet forward fused into one kernel.  #
# --------------------------------------------------------------- #
def make_resnet_kernel(offs, block_layers, block_num, has_jump, tm, n_sub):
    L = len(block_layers)
    n_mlp = L - 1
    w1 = block_layers[1]          # width of the jump / first-MLP outputs (fused split point)
    sub = tm // n_sub
    HIGH = lax.Precision.HIGHEST

    def kernel(x_ref, w_ref, b_ref, o_ref):
        it = iter(offs)

        def load(off):
            r0, out_r, in_r = off
            return w_ref[r0:r0 + out_r, 0:in_r], b_ref[r0:r0 + out_r, :]

        def lin(wb, h):           # h is (in, sub); result (out, sub); bias lane-broadcast
            w, b = wb
            return jnp.dot(w, h, preferred_element_type=jnp.float32, precision=HIGH) + b

        # ---- in_linear: K = in_num is tiny -> broadcast FMAs on the VPU ----
        r0, out_r, in_r = next(it)
        hs = []
        for c in range(n_sub):
            lo = c * sub
            if in_r <= 8:
                acc = (w_ref[r0:r0 + out_r, 0:1] * x_ref[0:1, lo:lo + sub]
                       + b_ref[r0:r0 + out_r, :])
                for j in range(1, in_r):
                    acc = acc + (w_ref[r0:r0 + out_r, j:j + 1]
                                 * x_ref[j:j + 1, lo:lo + sub])
            else:
                acc = lin((w_ref[r0:r0 + out_r, 0:in_r], b_ref[r0:r0 + out_r, :]),
                          x_ref[:, lo:lo + sub])
            hs.append(acc)

        # ---- residual blocks: x = tanh(MLP(x) + jump(x)); two independent sub-chains ----
        for _blk in range(block_num):
            if has_jump:
                wb = load(next(it))                        # fused [W_first ; W_jump]
                zs = [lin(wb, h) for h in hs]              # (2*w1, sub)
                ts = [z[:w1, :] for z in zs]               # sublane-aligned row split
                rs = [z[w1:, :] for z in zs]
                if n_mlp > 1:
                    ts = [jnp.tanh(t) for t in ts]         # first MLP layer is hidden
                    for _l in range(n_mlp - 2):
                        wb = load(next(it))
                        ts = [jnp.tanh(lin(wb, t)) for t in ts]
                    wb = load(next(it))                    # final MLP layer: linear only
                    ts = [lin(wb, t) for t in ts]
                # else: the fused first layer WAS the final MLP layer (no tanh)
            else:
                ts, rs = hs, hs                            # nn.Identity() jump
                for _l in range(n_mlp - 1):
                    wb = load(next(it))
                    ts = [jnp.tanh(lin(wb, t)) for t in ts]
                wb = load(next(it))                        # final MLP layer: linear only
                ts = [lin(wb, t) for t in ts]
            hs = [jnp.tanh(t + r) for t, r in zip(ts, rs)]

        # ---- out_linear + lane-dense store ----
        wb = load(next(it))
        for c in range(n_sub):
            o_ref[:, c * sub:(c + 1) * sub] = lin(wb, hs[c]).astype(o_ref.dtype)

    return kernel


# ----------------- #
# Python wrapper.   #
# ----------------- #
def _pick_batch_tile(N):
    """Full batch per grid step on single-TC chips (v5e/v6e); split across v7x's two TCs."""
    try:
        kind = jax.devices()[0].device_kind.lower()
    except Exception:
        kind = ""
    if "v7" in kind and N % 256 == 0:
        return N // 2
    return N


def resnet_forward(x, params, block_layers, block_num, has_jump, tm=None):
    N, in_num = x.shape
    L = len(block_layers)
    out_num = params[-2].shape[0]

    # Width constraints the PyTorch module itself needs to run (residual add + chaining).
    res_w = block_layers[1] if has_jump else block_layers[0]
    assert block_layers[-1] == res_w, \
        "residual add needs MLP output width == jump/identity width"
    assert block_num == 1 or block_layers[-1] == block_layers[0], \
        "stacking blocks needs block output width == block input width"

    if tm is None:
        tm = _pick_batch_tile(N)
    tm = min(tm, N)
    assert N % tm == 0, "batch must be divisible by the batch tile"
    assert tm == N or tm % 128 == 0, "batch tile must be the full batch or a multiple of 128"
    n_sub = 2 if tm % 256 == 0 else 1      # independent lane sub-chains hide MXU/EUP latency

    w_all, b_all, offs = pack_params_for_kernel(params, block_layers, block_num, has_jump)
    kernel = make_resnet_kernel(offs, block_layers, block_num, has_jump, tm, n_sub)

    # Advisory cost estimate so XLA can schedule/overlap this custom call.
    linear_dims = [(in_num, block_layers[0])]
    for _ in range(block_num):
        if has_jump:
            linear_dims.append((block_layers[0], 2 * block_layers[1]))
            linear_dims += [(block_layers[l], block_layers[l + 1]) for l in range(1, L - 1)]
        else:
            linear_dims += [(block_layers[l], block_layers[l + 1]) for l in range(L - 1)]
    linear_dims.append((block_layers[-1], out_num))
    flops = 2 * N * sum(fi * fo for fi, fo in linear_dims)
    tanh_per_sample = block_num * (sum(block_layers[1:L - 1]) + block_layers[-1])
    bytes_accessed = int((w_all.size + b_all.size + N * (in_num + out_num)) * 4)
    cost = pl.CostEstimate(flops=int(flops),
                           transcendentals=int(N * tanh_per_sample),
                           bytes_accessed=bytes_accessed)

    xt = x.T                                               # (in_num, N): batch on lanes
    out_t = pl.pallas_call(
        kernel,
        out_shape=jax.ShapeDtypeStruct((out_num, N), jnp.float32),
        grid_spec=pl.GridSpec(
            grid=(N // tm,),
            in_specs=[
                pl.BlockSpec((in_num, tm), lambda i: (0, i)),
                pl.BlockSpec(w_all.shape, lambda i: (0, 0)),   # packed weights, resident
                pl.BlockSpec(b_all.shape, lambda i: (0, 0)),   # packed biases, resident
            ],
            out_specs=pl.BlockSpec((out_num, tm), lambda i: (0, i)),
        ),
        compiler_params=pltpu.CompilerParams(dimension_semantics=("parallel",)),
        cost_estimate=cost,
    )(xt, w_all, b_all)
    return out_t.T                                         # back to (N, out_num)


# ------------------------------- #
# Pure-JAX reference for checking #
# ------------------------------- #
def resnet_reference(x, params, block_layers, block_num, has_jump):
    idx = 0

    def take():
        nonlocal idx
        w, b = params[idx], params[idx + 1]
        idx += 2
        return w, b

    def lin(h, w, b):                       # PyTorch layout: W is (out, in)
        return jnp.dot(h, w.T, precision=lax.Precision.HIGHEST) + b

    w, b = take()
    h = lin(x, w, b)
    for _ in range(block_num):
        t = h
        for _l in range(len(block_layers) - 2):
            w, b = take()
            t = jnp.tanh(lin(t, w, b))
        w, b = take()
        t = lin(t, w, b)
        if has_jump:
            w, b = take()
            r = lin(h, w, b)
        else:
            r = h
        h = jnp.tanh(t + r)
    w, b = take()
    return lin(h, w, b)


if __name__ == "__main__":
    key = jax.random.PRNGKey(0)
    k_param, k_param2, k_x = jax.random.split(key, 3)

    # Config 1: Identity jump (block_layers[0] == block_layers[1]); PINN-style sizes.
    in_num, out_num = 2, 1
    block_layers = [32, 32, 32]
    block_num = 3
    batch = 256
    params, has_jump = init_resnet_params(k_param, in_num, out_num, block_layers, block_num)
    x = jax.random.normal(k_x, (batch, in_num), dtype=jnp.float32)

    y = jax.block_until_ready(resnet_forward(x, params, block_layers, block_num, has_jump))
    y_ref = resnet_reference(x, params, block_layers, block_num, has_jump)
    assert y.shape == (batch, out_num)
    assert jnp.allclose(y, y_ref, rtol=1e-4, atol=1e-5), "mismatch (identity-jump config)"

    # Config 2: real jump linear (block_layers[0] != block_layers[1]), exercising the
    # fused [first-MLP ; jump] matmul path.  block_num=1: with 48->32 widths the PyTorch
    # module itself can only stack one such block (output width != input width).
    block_layers2 = [48, 32, 32]
    block_num2 = 1
    params2, has_jump2 = init_resnet_params(k_param2, in_num, out_num, block_layers2, block_num2)
    y2 = jax.block_until_ready(
        resnet_forward(x, params2, block_layers2, block_num2, has_jump2))
    y2_ref = resnet_reference(x, params2, block_layers2, block_num2, has_jump2)
    assert y2.shape == (batch, out_num)
    assert jnp.allclose(y2, y2_ref, rtol=1e-4, atol=1e-5), "mismatch (jump-linear config)"

    print("KERNEL_OK")
</pallas_src>

<mosaic_0001>
module attributes {stable_mosaic.version = 11 : i64} {
  func.func @kernel(%arg0: i32, %arg1: memref<2x256xf32, #tpu.memory_space<vmem>>, %arg2: memref<232x128xf32, #tpu.memory_space<vmem>>, %arg3: memref<232x1xf32, #tpu.memory_space<vmem>>, %arg4: memref<1x256xf32, #tpu.memory_space<vmem>>) attributes {dimension_semantics = [#tpu.dimension_semantics<parallel>], iteration_bounds = array<i64: 1>, scalar_prefetch = 0 : i64, scratch_operands = 0 : i64, tpu.core_type = #tpu.core_type<tc>, window_params = [{transform_indices = @transform_0, window_bounds = array<i64: 2, 256>}, {pipeline_mode = #tpu.pipeline_mode<synchronous>, transform_indices = @transform_1, window_bounds = array<i64: 232, 128>}, {pipeline_mode = #tpu.pipeline_mode<synchronous>, transform_indices = @transform_2, window_bounds = array<i64: 232, 1>}, {transform_indices = @transform_3, window_bounds = array<i64: 1, 256>}]} {
    %c0 = arith.constant 0 : index
    %c0_0 = arith.constant 0 : index
    %0 = vector.load %arg2[%c0, %c0_0] : memref<232x128xf32, #tpu.memory_space<vmem>>, vector<32x1xf32>
    %c0_1 = arith.constant 0 : index
    %c0_2 = arith.constant 0 : index
    %1 = vector.load %arg1[%c0_1, %c0_2] : memref<2x256xf32, #tpu.memory_space<vmem>>, vector<1x128xf32>
    %2 = vector.broadcast %0 : vector<32x1xf32> to vector<32x128xf32>
    %3 = vector.broadcast %1 : vector<1x128xf32> to vector<32x128xf32>
    %4 = arith.mulf %2, %3 : vector<32x128xf32>
    %c0_3 = arith.constant 0 : index
    %c0_4 = arith.constant 0 : index
    %5 = vector.load %arg3[%c0_3, %c0_4] : memref<232x1xf32, #tpu.memory_space<vmem>>, vector<32x1xf32>
    %6 = vector.broadcast %5 : vector<32x1xf32> to vector<32x128xf32>
    %7 = arith.addf %4, %6 : vector<32x128xf32>
    %c0_5 = arith.constant 0 : index
    %c1 = arith.constant 1 : index
    %8 = vector.load %arg2[%c0_5, %c1] : memref<232x128xf32, #tpu.memory_space<vmem>>, vector<32x1xf32>
    %c1_6 = arith.constant 1 : index
    %c0_7 = arith.constant 0 : index
    %9 = vector.load %arg1[%c1_6, %c0_7] : memref<2x256xf32, #tpu.memory_space<vmem>>, vector<1x128xf32>
    %10 = vector.broadcast %8 : vector<32x1xf32> to vector<32x128xf32>
    %11 = vector.broadcast %9 : vector<1x128xf32> to vector<32x128xf32>
    %12 = arith.mulf %10, %11 : vector<32x128xf32>
    %13 = arith.addf %7, %12 : vector<32x128xf32>
    %c0_8 = arith.constant 0 : index
    %c0_9 = arith.constant 0 : index
    %14 = vector.load %arg2[%c0_8, %c0_9] : memref<232x128xf32, #tpu.memory_space<vmem>>, vector<32x1xf32>
    %c0_10 = arith.constant 0 : index
    %c128 = arith.constant 128 : index
    %15 = vector.load %arg1[%c0_10, %c128] : memref<2x256xf32, #tpu.memory_space<vmem>>, vector<1x128xf32>
    %16 = vector.broadcast %14 : vector<32x1xf32> to vector<32x128xf32>
    %17 = vector.broadcast %15 : vector<1x128xf32> to vector<32x128xf32>
    %18 = arith.mulf %16, %17 : vector<32x128xf32>
    %c0_11 = arith.constant 0 : index
    %c0_12 = arith.constant 0 : index
    %19 = vector.load %arg3[%c0_11, %c0_12] : memref<232x1xf32, #tpu.memory_space<vmem>>, vector<32x1xf32>
    %20 = vector.broadcast %19 : vector<32x1xf32> to vector<32x128xf32>
    %21 = arith.addf %18, %20 : vector<32x128xf32>
    %c0_13 = arith.constant 0 : index
    %c1_14 = arith.constant 1 : index
    %22 = vector.load %arg2[%c0_13, %c1_14] : memref<232x128xf32, #tpu.memory_space<vmem>>, vector<32x1xf32>
    %c1_15 = arith.constant 1 : index
    %c128_16 = arith.constant 128 : index
    %23 = vector.load %arg1[%c1_15, %c128_16] : memref<2x256xf32, #tpu.memory_space<vmem>>, vector<1x128xf32>
    %24 = vector.broadcast %22 : vector<32x1xf32> to vector<32x128xf32>
    %25 = vector.broadcast %23 : vector<1x128xf32> to vector<32x128xf32>
    %26 = arith.mulf %24, %25 : vector<32x128xf32>
    %27 = arith.addf %21, %26 : vector<32x128xf32>
    %c32 = arith.constant 32 : index
    %c0_17 = arith.constant 0 : index
    %28 = vector.load %arg2[%c32, %c0_17] : memref<232x128xf32, #tpu.memory_space<vmem>>, vector<32x32xf32>
    %c32_18 = arith.constant 32 : index
    %c0_19 = arith.constant 0 : index
    %29 = vector.load %arg3[%c32_18, %c0_19] : memref<232x1xf32, #tpu.memory_space<vmem>>, vector<32x1xf32>
    %cst = arith.constant dense<0.000000e+00> : vector<32x128xf32>
    %30 = tpu.matmul %28, %13, %cst {dimension_numbers = #tpu.dot_dimension_numbers<[1], [0], [0], [1], [0, 0, 1, 1], [], []>, precision = #tpu.contract_precision<fp32>} : vector<32x32xf32>, vector<32x128xf32>, vector<32x128xf32> -> vector<32x128xf32>
    %31 = vector.broadcast %29 : vector<32x1xf32> to vector<32x128xf32>
    %32 = arith.addf %30, %31 : vector<32x128xf32>
    %33 = math.tanh %32 : vector<32x128xf32>
    %cst_20 = arith.constant dense<0.000000e+00> : vector<32x128xf32>
    %34 = tpu.matmul %28, %27, %cst_20 {dimension_numbers = #tpu.dot_dimension_numbers<[1], [0], [0], [1], [0, 0, 1, 1], [], []>, precision = #tpu.contract_precision<fp32>} : vector<32x32xf32>, vector<32x128xf32>, vector<32x128xf32> -> vector<32x128xf32>
    %35 = vector.broadcast %29 : vector<32x1xf32> to vector<32x128xf32>
    %36 = arith.addf %34, %35 : vector<32x128xf32>
    %37 = math.tanh %36 : vector<32x128xf32>
    %c64 = arith.constant 64 : index
    %c0_21 = arith.constant 0 : index
    %38 = vector.load %arg2[%c64, %c0_21] : memref<232x128xf32, #tpu.memory_space<vmem>>, vector<32x32xf32>
    %c64_22 = arith.constant 64 : index
    %c0_23 = arith.constant 0 : index
    %39 = vector.load %arg3[%c64_22, %c0_23] : memref<232x1xf32, #tpu.memory_space<vmem>>, vector<32x1xf32>
    %cst_24 = arith.constant dense<0.000000e+00> : vector<32x128xf32>
    %40 = tpu.matmul %38, %33, %cst_24 {dimension_numbers = #tpu.dot_dimension_numbers<[1], [0], [0], [1], [0, 0, 1, 1], [], []>, precision = #tpu.contract_precision<fp32>} : vector<32x32xf32>, vector<32x128xf32>, vector<32x128xf32> -> vector<32x128xf32>
    %41 = vector.broadcast %39 : vector<32x1xf32> to vector<32x128xf32>
    %42 = arith.addf %40, %41 : vector<32x128xf32>
    %cst_25 = arith.constant dense<0.000000e+00> : vector<32x128xf32>
    %43 = tpu.matmul %38, %37, %cst_25 {dimension_numbers = #tpu.dot_dimension_numbers<[1], [0], [0], [1], [0, 0, 1, 1], [], []>, precision = #tpu.contract_precision<fp32>} : vector<32x32xf32>, vector<32x128xf32>, vector<32x128xf32> -> vector<32x128xf32>
    %44 = vector.broadcast %39 : vector<32x1xf32> to vector<32x128xf32>
    %45 = arith.addf %43, %44 : vector<32x128xf32>
    %46 = arith.addf %42, %13 : vector<32x128xf32>
    %47 = math.tanh %46 : vector<32x128xf32>
    %48 = arith.addf %45, %27 : vector<32x128xf32>
    %49 = math.tanh %48 : vector<32x128xf32>
    %c96 = arith.constant 96 : index
    %c0_26 = arith.constant 0 : index
    %50 = vector.load %arg2[%c96, %c0_26] : memref<232x128xf32, #tpu.memory_space<vmem>>, vector<32x32xf32>
    %c96_27 = arith.constant 96 : index
    %c0_28 = arith.constant 0 : index
    %51 = vector.load %arg3[%c96_27, %c0_28] : memref<232x1xf32, #tpu.memory_space<vmem>>, vector<32x1xf32>
    %cst_29 = arith.constant dense<0.000000e+00> : vector<32x128xf32>
    %52 = tpu.matmul %50, %47, %cst_29 {dimension_numbers = #tpu.dot_dimension_numbers<[1], [0], [0], [1], [0, 0, 1, 1], [], []>, precision = #tpu.contract_precision<fp32>} : vector<32x32xf32>, vector<32x128xf32>, vector<32x128xf32> -> vector<32x128xf32>
    %53 = vector.broadcast %51 : vector<32x1xf32> to vector<32x128xf32>
    %54 = arith.addf %52, %53 : vector<32x128xf32>
    %55 = math.tanh %54 : vector<32x128xf32>
    %cst_30 = arith.constant dense<0.000000e+00> : vector<32x128xf32>
    %56 = tpu.matmul %50, %49, %cst_30 {dimension_numbers = #tpu.dot_dimension_numbers<[1], [0], [0], [1], [0, 0, 1, 1], [], []>, precision = #tpu.contract_precision<fp32>} : vector<32x32xf32>, vector<32x128xf32>, vector<32x128xf32> -> vector<32x128xf32>
    %57 = vector.broadcast %51 : vector<32x1xf32> to vector<32x128xf32>
    %58 = arith.addf %56, %57 : vector<32x128xf32>
    %59 = math.tanh %58 : vector<32x128xf32>
    %c128_31 = arith.constant 128 : index
    %c0_32 = arith.constant 0 : index
    %60 = vector.load %arg2[%c128_31, %c0_32] : memref<232x128xf32, #tpu.memory_space<vmem>>, vector<32x32xf32>
    %c128_33 = arith.constant 128 : index
    %c0_34 = arith.constant 0 : index
    %61 = vector.load %arg3[%c128_33, %c0_34] : memref<232x1xf32, #tpu.memory_space<vmem>>, vector<32x1xf32>
    %cst_35 = arith.constant dense<0.000000e+00> : vector<32x128xf32>
    %62 = tpu.matmul %60, %55, %cst_35 {dimension_numbers = #tpu.dot_dimension_numbers<[1], [0], [0], [1], [0, 0, 1, 1], [], []>, precision = #tpu.contract_precision<fp32>} : vector<32x32xf32>, vector<32x128xf32>, vector<32x128xf32> -> vector<32x128xf32>
    %63 = vector.broadcast %61 : vector<32x1xf32> to vector<32x128xf32>
    %64 = arith.addf %62, %63 : vector<32x128xf32>
    %cst_36 = arith.constant dense<0.000000e+00> : vector<32x128xf32>
    %65 = tpu.matmul %60, %59, %cst_36 {dimension_numbers = #tpu.dot_dimension_numbers<[1], [0], [0], [1], [0, 0, 1, 1], [], []>, precision = #tpu.contract_precision<fp32>} : vector<32x32xf32>, vector<32x128xf32>, vector<32x128xf32> -> vector<32x128xf32>
    %66 = vector.broadcast %61 : vector<32x1xf32> to vector<32x128xf32>
    %67 = arith.addf %65, %66 : vector<32x128xf32>
    %68 = arith.addf %64, %47 : vector<32x128xf32>
    %69 = math.tanh %68 : vector<32x128xf32>
    %70 = arith.addf %67, %49 : vector<32x128xf32>
    %71 = math.tanh %70 : vector<32x128xf32>
    %c160 = arith.constant 160 : index
    %c0_37 = arith.constant 0 : index
    %72 = vector.load %arg2[%c160, %c0_37] : memref<232x128xf32, #tpu.memory_space<vmem>>, vector<32x32xf32>
    %c160_38 = arith.constant 160 : index
    %c0_39 = arith.constant 0 : index
    %73 = vector.load %arg3[%c160_38, %c0_39] : memref<232x1xf32, #tpu.memory_space<vmem>>, vector<32x1xf32>
    %cst_40 = arith.constant dense<0.000000e+00> : vector<32x128xf32>
    %74 = tpu.matmul %72, %69, %cst_40 {dimension_numbers = #tpu.dot_dimension_numbers<[1], [0], [0], [1], [0, 0, 1, 1], [], []>, precision = #tpu.contract_precision<fp32>} : vector<32x32xf32>, vector<32x128xf32>, vector<32x128xf32> -> vector<32x128xf32>
    %75 = vector.broadcast %73 : vector<32x1xf32> to vector<32x128xf32>
    %76 = arith.addf %74, %75 : vector<32x128xf32>
    %77 = math.tanh %76 : vector<32x128xf32>
    %cst_41 = arith.constant dense<0.000000e+00> : vector<32x128xf32>
    %78 = tpu.matmul %72, %71, %cst_41 {dimension_numbers = #tpu.dot_dimension_numbers<[1], [0], [0], [1], [0, 0, 1, 1], [], []>, precision = #tpu.contract_precision<fp32>} : vector<32x32xf32>, vector<32x128xf32>, vector<32x128xf32> -> vector<32x128xf32>
    %79 = vector.broadcast %73 : vector<32x1xf32> to vector<32x128xf32>
    %80 = arith.addf %78, %79 : vector<32x128xf32>
    %81 = math.tanh %80 : vector<32x128xf32>
    %c192 = arith.constant 192 : index
    %c0_42 = arith.constant 0 : index
    %82 = vector.load %arg2[%c192, %c0_42] : memref<232x128xf32, #tpu.memory_space<vmem>>, vector<32x32xf32>
    %c192_43 = arith.constant 192 : index
    %c0_44 = arith.constant 0 : index
    %83 = vector.load %arg3[%c192_43, %c0_44] : memref<232x1xf32, #tpu.memory_space<vmem>>, vector<32x1xf32>
    %cst_45 = arith.constant dense<0.000000e+00> : vector<32x128xf32>
    %84 = tpu.matmul %82, %77, %cst_45 {dimension_numbers = #tpu.dot_dimension_numbers<[1], [0], [0], [1], [0, 0, 1, 1], [], []>, precision = #tpu.contract_precision<fp32>} : vector<32x32xf32>, vector<32x128xf32>, vector<32x128xf32> -> vector<32x128xf32>
    %85 = vector.broadcast %83 : vector<32x1xf32> to vector<32x128xf32>
    %86 = arith.addf %84, %85 : vector<32x128xf32>
    %cst_46 = arith.constant dense<0.000000e+00> : vector<32x128xf32>
    %87 = tpu.matmul %82, %81, %cst_46 {dimension_numbers = #tpu.dot_dimension_numbers<[1], [0], [0], [1], [0, 0, 1, 1], [], []>, precision = #tpu.contract_precision<fp32>} : vector<32x32xf32>, vector<32x128xf32>, vector<32x128xf32> -> vector<32x128xf32>
    %88 = vector.broadcast %83 : vector<32x1xf32> to vector<32x128xf32>
    %89 = arith.addf %87, %88 : vector<32x128xf32>
    %90 = arith.addf %86, %69 : vector<32x128xf32>
    %91 = math.tanh %90 : vector<32x128xf32>
    %92 = arith.addf %89, %71 : vector<32x128xf32>
    %93 = math.tanh %92 : vector<32x128xf32>
    %c224 = arith.constant 224 : index
    %c0_47 = arith.constant 0 : index
    %94 = vector.load %arg2[%c224, %c0_47] : memref<232x128xf32, #tpu.memory_space<vmem>>, vector<1x32xf32>
    %c224_48 = arith.constant 224 : index
    %c0_49 = arith.constant 0 : index
    %95 = vector.load %arg3[%c224_48, %c0_49] : memref<232x1xf32, #tpu.memory_space<vmem>>, vector<1x1xf32>
    %cst_50 = arith.constant dense<0.000000e+00> : vector<1x128xf32>
    %96 = tpu.matmul %94, %91, %cst_50 {dimension_numbers = #tpu.dot_dimension_numbers<[1], [0], [0], [1], [0, 0, 1, 1], [], []>, precision = #tpu.contract_precision<fp32>} : vector<1x32xf32>, vector<32x128xf32>, vector<1x128xf32> -> vector<1x128xf32>
    %97 = vector.broadcast %95 : vector<1x1xf32> to vector<1x128xf32>
    %98 = arith.addf %96, %97 : vector<1x128xf32>
    %c0_51 = arith.constant 0 : index
    %c0_52 = arith.constant 0 : index
    %99 = vector.load %arg4[%c0_51, %c0_52] : memref<1x256xf32, #tpu.memory_space<vmem>>, vector<1x128xf32>
    tpu.vector_store %arg4[%c0_51, %c0_52], %98 {strides = array<i32>} : memref<1x256xf32, #tpu.memory_space<vmem>>, vector<1x128xf32>,
    %cst_53 = arith.constant dense<0.000000e+00> : vector<1x128xf32>
    %100 = tpu.matmul %94, %93, %cst_53 {dimension_numbers = #tpu.dot_dimension_numbers<[1], [0], [0], [1], [0, 0, 1, 1], [], []>, precision = #tpu.contract_precision<fp32>} : vector<1x32xf32>, vector<32x128xf32>, vector<1x128xf32> -> vector<1x128xf32>
    %101 = vector.broadcast %95 : vector<1x1xf32> to vector<1x128xf32>
    %102 = arith.addf %100, %101 : vector<1x128xf32>
    %c0_54 = arith.constant 0 : index
    %c128_55 = arith.constant 128 : index
    %103 = vector.load %arg4[%c0_54, %c128_55] : memref<1x256xf32, #tpu.memory_space<vmem>>, vector<1x128xf32>
    tpu.vector_store %arg4[%c0_54, %c128_55], %102 {strides = array<i32>} : memref<1x256xf32, #tpu.memory_space<vmem>>, vector<1x128xf32>,
    return
  }
  func.func @transform_0(%arg0: i32) -> (i32, i32) {
    %c0_i32 = arith.constant 0 : i32
    %c0_i32_0 = arith.constant 0 : i32
    return %c0_i32, %arg0 : i32, i32
  }
  func.func @transform_1(%arg0: i32) -> (i32, i32) {
    %c0_i32 = arith.constant 0 : i32
    %c0_i32_0 = arith.constant 0 : i32
    %c0_i32_1 = arith.constant 0 : i32
    return %c0_i32, %c0_i32_0 : i32, i32
  }
  func.func @transform_2(%arg0: i32) -> (i32, i32) {
    %c0_i32 = arith.constant 0 : i32
    %c0_i32_0 = arith.constant 0 : i32
    %c0_i32_1 = arith.constant 0 : i32
    return %c0_i32, %c0_i32_0 : i32, i32
  }
  func.func @transform_3(%arg0: i32) -> (i32, i32) {
    %c0_i32 = arith.constant 0 : i32
    %c0_i32_0 = arith.constant 0 : i32
    return %c0_i32, %arg0 : i32, i32
  }
}

</mosaic_0001>

<bundles_post_ra>
// kernel: tpu_custom_call.1
= control target key start
LH: loop header
LB: loop body
LE: loop exit
PB: predicated region body
PF: predicated region fallthrough
CT: control target
= control target key end

     0   :  { %v11684_v2 = vmov 0   ;;  %s13149_s0 = inlined_call_operand.vmem [shape: f32[2,256], index: 0, kind: input, shape index: {}]   ;;  %s13150_s1 = inlined_call_operand.vmem [shape: f32[232,128], index: 1, kind: input, shape index: {}]   ;;  %s13151_s2 = inlined_call_operand.vmem [shape: f32[232,1], index: 2, kind: input, shape index: {}]   ;;  %s13152_s3 = inlined_call_operand.hbm [shape: f32[1,256], index: 3, kind: output, shape index: {}]  }
   0x1   :  { %v48_v0 = vld [vmem:[%s13151_s2] sm:$0xff]  ;;  %11557 = vset.pattern.permute.xlu1 %v11684_v2  ;;  %11556 = vset.pattern.permute.xlu0 %v11684_v2  ;;  %v49_v3 = vld [vmem:[%s13151_s2 + $0x8] sm:$0xff] }
   0x2   :  { %v15_v1 = vld [vmem:[%s13150_s1] sm:$0xff]  ;;  %54 = vperm.xlu1 %11557, %v48_v0   ;;  %v16_v4 = vld [vmem:[%s13150_s1 + $0x8] sm:$0xff] }
   0x3   :  { %22 = vperm.xlu0 %11556, %v15_v1  }
   0x4   :  { %8 = vsyncpa [#allocation3], 0  ;;  %v18_v5 = vld [vmem:[%s13150_s1 + $0x18] sm:$0xff]  ;;  %v11685_v6 = vmov 1   ;;  %v17_v7 = vld [vmem:[%s13150_s1 + $0x10] sm:$0xff]  ;;  %vm159_vm0 = vcmask 261120  }
   0x5   :  { %v50_v8 = vld [vmem:[%s13151_s2 + $0x10] sm:$0xff]  ;;  %v51_v9 = vld [vmem:[%s13151_s2 + $0x18] sm:$0xff]  ;;  %v131_v10 = vld [vmem:[%s13150_s1 + $0x20] sm:$0xff]  ;;  %vm11687_vm1 = vmmov 0  }
   0x6   :  { %59 = vperm.xlu1 %11557, %v49_v3   ;;  %v161_v11 = vsel %vm159_vm0, %v131_v10, 0  ;;  %v135_v17 = vld [vmem:[%s13151_s2 + $0x20] sm:$0xff]  ;;  %v136_v18 = vld [vmem:[%s13151_s2 + $0x28] sm:$0xff]  ;;  %v137_v19 = vld [vmem:[%s13151_s2 + $0x30] sm:$0xff] }
   0x7   :  { %27 = vperm.xlu0 %11556, %v16_v4   ;;  %v11738_v12 = vand.u32 4294901760, %v161_v11  ;;  %v1412_v20 = vld [vmem:[%s13151_s2 + $0x40] sm:$0xff]  ;;  %v138_v21 = vld [vmem:[%s13151_s2 + $0x38] sm:$0xff]  ;;  %v1414_v22 = vld [vmem:[%s13151_s2 + $0x50] sm:$0xff] }
   0x8   :  { %v1413_v23 = vld [vmem:[%s13151_s2 + $0x48] sm:$0xff]  ;;  %v2696_v24 = vld [vmem:[%s13151_s2 + $0x60] sm:$0xff]  ;;  %v1415_v25 = vld [vmem:[%s13151_s2 + $0x58] sm:$0xff] }
   0x9   :  { %v11741_v13 = vsub.f32 %v161_v11, %v11738_v12  ;;  %v2698_v26 = vld [vmem:[%s13151_s2 + $0x70] sm:$0xff]  ;;  %v2697_v27 = vld [vmem:[%s13151_s2 + $0x68] sm:$0xff]  ;;  %v3972_v28 = vld [vmem:[%s13151_s2 + $0x80] sm:$0xff] }
   0xa   :  { %11558 = vset.pattern.permute.xlu1 %v11685_v6  ;;  %v2699_v29 = vld [vmem:[%s13151_s2 + $0x78] sm:$0xff]  ;;  %v3974_v30 = vld [vmem:[%s13151_s2 + $0x90] sm:$0xff]  ;;  %v3973_v31 = vld [vmem:[%s13151_s2 + $0x88] sm:$0xff] }
   0xb   :  { %37 = vperm.xlu0 %11556, %v18_v5   ;;  %82 = vperm.xlu1 %11558, %v16_v4   ;;  %v11744_v14 = vand.u32 4294901760, %v11741_v13  ;;  %v5256_v32 = vld [vmem:[%s13151_s2 + $0xa0] sm:$0xff]  ;;  %v3975_v33 = vld [vmem:[%s13151_s2 + $0x98] sm:$0xff]  ;;  %v5258_v34 = vld [vmem:[%s13151_s2 + $0xb0] sm:$0xff] }
   0xc   :  { %v5257_v35 = vld [vmem:[%s13151_s2 + $0xa8] sm:$0xff]  ;;  %v6532_v36 = vld [vmem:[%s13151_s2 + $0xc0] sm:$0xff]  ;;  %v5259_v37 = vld [vmem:[%s13151_s2 + $0xb8] sm:$0xff] }
   0xd   :  { %v244_v15 = vsub.f32 %v11741_v13, %v11744_v14  ;;  %v6534_v38 = vld [vmem:[%s13151_s2 + $0xd0] sm:$0xff]  ;;  %v6533_v39 = vld [vmem:[%s13151_s2 + $0xc8] sm:$0xff]  ;;  %v7813_v42 = vld [vmem:[%s13151_s2 + $0xe0] sm:$0x1] }
   0xe   :  { %v6535_v43 = vld [vmem:[%s13151_s2 + $0xd8] sm:$0xff]  ;;  %v11826_v46 = vld [vmem:[%s13149_s0] ss:$0 sm:$0xff]  ;;  %v11831_v47 = vld [vmem:[%s13149_s0 + $0x2] ss:$0 sm:$0xff] }
   0xf   :  { %11560 = vset.pattern.permute.xlu0 %v11685_v6  ;;  %11559 = vset.pattern.permute.xlu1 %v11684_v2  ;;  %v245_v16 = vand.u32 4294901760, %v244_v15  ;;  %v11838_v50 = vld [vmem:[%s13149_s0 + $0x1] ss:$0 sm:$0xff]  ;;  %v11843_v51 = vld [vmem:[%s13149_s0 + $0x3] ss:$0 sm:$0xff]  ;;  %v132_v58 = vld [vmem:[%s13150_s1 + $0x28] sm:$0xff] }
  0x10   :  { %78 = vperm.xlu0 %11560, %v15_v1   ;;  %32 = vperm.xlu1 %11559, %v17_v7   ;;  %v164_v0 = vsel %vm159_vm0, %v132_v58, 0  ;;  %v133_v1 = vld [vmem:[%s13150_s1 + $0x30] sm:$0xff]  ;;  %v134_v11 = vld [vmem:[%s13150_s1 + $0x38] sm:$0xff] }
  0x11   :  { %9460 = vmatprep.mubr.f32.mxu0 %v245_v16  ;;  %9544 = vmatprep.mubr.f32.mxu1 %v245_v16  ;;  %v167_v10 = vsel %vm159_vm0, %v133_v1, 0 }
  0x14   :  { %86 = vperm.xlu0 %11560, %v17_v7   ;;  %64 = vperm.xlu1 %11559, %v50_v8  }
  0x18   :  { %11563 = vset.pattern.permute.xlu0 %v11684_v2  ;;  %69 = vperm.xlu1 %11559, %v51_v9   ;;  %v11866_v9 = vand.u32 4294901760, %v164_v0 }
  0x19   :  { %146 = vperm.xlu0 %11563, %v136_v18  }
  0x1c   :  { %11561 = vset.pattern.permute.xlu1 %v11685_v6 }
  0x1d   :  { %90 = vperm.xlu1 %11561, %v18_v5   ;;  %1418 = vperm.xlu0 %11563, %v1412_v20  }
  0x21   :  { %11562 = vset.pattern.permute.xlu1 %v11684_v2  ;;  %1428 = vperm.xlu0 %11563, %v1414_v22  }
  0x22   :  { %141 = vperm.xlu1 %11562, %v135_v17  }
  0x25   :  { %2702 = vperm.xlu0 %11563, %v2696_v24  }
  0x26   :  { %151 = vperm.xlu1 %11562, %v137_v19  }
  0x29   :  { %2712 = vperm.xlu0 %11563, %v2698_v26  }
  0x2a   :  { %156 = vperm.xlu1 %11562, %v138_v21  }
  0x2d   :  { %3978 = vperm.xlu0 %11563, %v3972_v28   ;;  %v170_v28 = vsel %vm159_vm0, %v134_v11, 0 }
  0x2e   :  { %1423 = vperm.xlu1 %11562, %v1413_v23  }
  0x31   :  { %3988 = vperm.xlu0 %11563, %v3974_v30  }
  0x32   :  { %1433 = vperm.xlu1 %11562, %v1415_v25  }
  0x35   :  { %5262 = vperm.xlu0 %11563, %v5256_v32  }
  0x36   :  { %2707 = vperm.xlu1 %11562, %v2697_v27   ;;  %v11880_v27 = vand.u32 4294901760, %v167_v10 }
  0x39   :  { %5272 = vperm.xlu0 %11563, %v5258_v34  }
  0x3a   :  { %2717 = vperm.xlu1 %11562, %v2699_v29  }
  0x3d   :  { %6538 = vperm.xlu0 %11563, %v6532_v36  }
  0x3e   :  { %3983 = vperm.xlu1 %11562, %v3973_v31  }
  0x41   :  { %6548 = vperm.xlu0 %11563, %v6534_v38   ;;  %v11906_v38 = vsub.f32 %v164_v0, %v11866_v9 }
  0x42   :  { %3993 = vperm.xlu1 %11562, %v3975_v33  }
  0x45   :  { %7816 = vperm.xlu0 %11563, %v7813_v42  }
  0x46   :  { %5267 = vperm.xlu1 %11562, %v5257_v35  }
  0x4a   :  { %5277 = vperm.xlu1 %11562, %v5259_v37  }
  0x4e   :  { %6543 = vperm.xlu1 %11562, %v6533_v39   ;;  %v11908_v39 = vand.u32 4294901760, %v170_v28 }
  0x52   :  { %6553 = vperm.xlu1 %11562, %v6535_v43  }
  0x81   :  { %v55_v40 = vpop.permute.xlu1 %54 }
  0x82   :  { %v23_v41 = vpop.permute.xlu0 %22 }
  0x83   :  { %v44_v54 = vmul.f32 %v11826_v46, %v23_v41  ;;  %v110_v55 = vmul.f32 %v11831_v47, %v23_v41 }
  0x85   :  { %v60_v44 = vpop.permute.xlu1 %59  ;;  %v72_v2 = vadd.f32 %v55_v40, %v44_v54  ;;  %v114_v3 = vadd.f32 %v110_v55, %v55_v40  ;;  %v11924_v54 = vand.u32 4294901760, %v11906_v38  ;;  %v11927_v55 = vsub.f32 %v170_v28, %v11908_v39 }
  0x86   :  { %v28_v45 = vpop.permute.xlu0 %27 }
  0x87   :  { %v45_v48 = vmul.f32 %v11826_v46, %v28_v45  ;;  %v111_v49 = vmul.f32 %v11831_v47, %v28_v45 }
  0x89   :  { %v73_v59 = vadd.f32 %v60_v44, %v45_v48  ;;  %v115_v60 = vadd.f32 %v111_v49, %v60_v44  ;;  %v11917_v44 = vsub.f32 %v167_v10, %v11880_v27 }
  0x8a   :  { %v38_v52 = vpop.permute.xlu0 %37  ;;  %v83_v53 = vpop.permute.xlu1 %82 }
  0x8b   :  { %v98_v56 = vmul.f32 %v11838_v50, %v83_v53  ;;  %v124_v57 = vmul.f32 %v11843_v51, %v83_v53  ;;  %v47_v45 = vmul.f32 %v11826_v46, %v38_v52  ;;  %v113_v48 = vmul.f32 %v11831_v47, %v38_v52 }
  0x8d   :  { %v11852_v61 = vadd.f32 %v98_v56, %v73_v59  ;;  %v11854_v62 = vadd.f32 %v124_v57, %v115_v60 }
  0x8f   :  { %v79_v63 = vpop.permute.xlu0 %78  ;;  %v33_v6 = vpop.permute.xlu1 %32  ;;  %v176_v15 = vand.u32 4294901760, %v11852_v61  ;;  %v794_v16 = vand.u32 4294901760, %v11854_v62 }
  0x90   :  { %v97_v4 = vmul.f32 %v11838_v50, %v79_v63  ;;  %v123_v5 = vmul.f32 %v11843_v51, %v79_v63  ;;  %v46_v17 = vmul.f32 %v11826_v46, %v33_v6  ;;  %v112_v18 = vmul.f32 %v11831_v47, %v33_v6 }
  0x91   :  { %v11894_v33 = vsub.f32 %v11852_v61, %v176_v15  ;;  %v11897_v34 = vsub.f32 %v11854_v62, %v794_v16 }
  0x92   :  { %v11862_v7 = vadd.f32 %v97_v4, %v72_v2  ;;  %v11864_v8 = vadd.f32 %v123_v5, %v114_v3  ;;  %v11950_v2 = vand.u32 4294901760, %v11917_v44 }
  0x93   :  { %v87_v19 = vpop.permute.xlu0 %86  ;;  %v65_v22 = vpop.permute.xlu1 %64  ;;  %v291_v49 = vand.u32 4294901760, %v11894_v33  ;;  %v909_v53 = vand.u32 4294901760, %v11897_v34 }
  0x94   :  { %v173_v20 = vand.u32 4294901760, %v11862_v7  ;;  %v791_v21 = vand.u32 4294901760, %v11864_v8  ;;  %v99_v23 = vmul.f32 %v11838_v50, %v87_v19  ;;  %v125_v24 = vmul.f32 %v11843_v51, %v87_v19 }
  0x95   :  { %v74_v25 = vadd.f32 %v65_v22, %v46_v17  ;;  %v116_v26 = vadd.f32 %v112_v18, %v65_v22  ;;  %v292_v0 = vsub.f32 %v11894_v33, %v291_v49  ;;  %v910_v1 = vsub.f32 %v11897_v34, %v909_v53 }
  0x96   :  { %v11883_v29 = vpack.c.bf16 %v176_v15, %v173_v20  ;;  %v11886_v30 = vsub.f32 %v11862_v7, %v173_v20  ;;  %v11888_v31 = vpack.c.bf16 %v794_v16, %v791_v21  ;;  %v11891_v32 = vsub.f32 %v11864_v8, %v791_v21 }
  0x97   :  { %v11899_v35 = vadd.f32 %v99_v23, %v74_v25  ;;  %v11901_v36 = vadd.f32 %v125_v24, %v116_v26  ;;  %v70_v37 = vpop.permute.xlu1 %69  ;;  %v293_v17 = vand.u32 4294901760, %v292_v0  ;;  %v911_v18 = vand.u32 4294901760, %v910_v1 }
  0x98   :  { %10593 = vmatprep.subr.bf16.mxu0 %v11883_v29  ;;  %10641 = vmatprep.subr.bf16.mxu1 %v11888_v31  ;;  %v284_v40 = vand.u32 4294901760, %v11886_v30  ;;  %v902_v41 = vand.u32 4294901760, %v11891_v32  ;;  %v75_v56 = vadd.f32 %v70_v37, %v47_v45  ;;  %v117_v57 = vadd.f32 %v113_v48, %v70_v37 }
  0x99   :  { %10595 = vmatpush3.bf16.msra.mxu0 %v11883_v29  ;;  %10643 = vmatpush3.bf16.msra.mxu1 %v11888_v31  ;;  %v179_v42 = vand.u32 4294901760, %v11899_v35  ;;  %v797_v43 = vand.u32 4294901760, %v11901_v36  ;;  %v264_v19 = vsub.f32 %v11917_v44, %v11950_v2 }
  0x9a   :  { %v285_v59 = vsub.f32 %v11886_v30, %v284_v40  ;;  %v903_v46 = vsub.f32 %v11891_v32, %v902_v41 }
  0x9b   :  { %v11936_v47 = vsub.f32 %v11899_v35, %v179_v42  ;;  %v11939_v52 = vsub.f32 %v11901_v36, %v797_v43  ;;  %v265_v48 = vand.u32 4294901760, %v264_v19 }
  0x9c   :  { %v91_v58 = vpop.permute.xlu1 %90  ;;  %v286_v5 = vand.u32 4294901760, %v285_v59  ;;  %v904_v6 = vand.u32 4294901760, %v903_v46 }
  0x9d   :  { %v100_v60 = vmul.f32 %v11838_v50, %v91_v58  ;;  %v126_v63 = vmul.f32 %v11843_v51, %v91_v58  ;;  %v254_v50 = vsub.f32 %v11906_v38, %v11924_v54  ;;  %v11959_v51 = vand.u32 4294901760, %v11927_v55 }
  0x9e   :  { %v298_v15 = vand.u32 4294901760, %v11936_v47  ;;  %v916_v16 = vand.u32 4294901760, %v11939_v52  ;;  %v10600_v24 = vpack.c.bf16 %v293_v17, %v286_v5  ;;  %v10648_v25 = vpack.c.bf16 %v911_v18, %v904_v6 }
  0x9f   :  { %v11952_v3 = vadd.f32 %v100_v60, %v75_v56  ;;  %v11954_v4 = vadd.f32 %v126_v63, %v117_v57  ;;  %v255_v26 = vand.u32 4294901760, %v254_v50  ;;  %v274_v28 = vsub.f32 %v11927_v55, %v11959_v51 }
  0xa0   :  { %v299_v37 = vsub.f32 %v11936_v47, %v298_v15  ;;  %v10608_v5 = vpack.c.bf16 %v11894_v33, %v11886_v30  ;;  %v10656_v6 = vpack.c.bf16 %v11897_v34, %v11891_v32 }
  0xa1   :  { %v182_v10 = vand.u32 4294901760, %v11952_v3  ;;  %v800_v11 = vand.u32 4294901760, %v11954_v4  ;;  %v275_v58 = vand.u32 4294901760, %v274_v28  ;;  %v142_v34 = vpop.permute.xlu1 %141 }
  0xa2   :  { %v300_v59 = vand.u32 4294901760, %v299_v37 }
  0xa3   :  { %v11967_v20 = vpack.c.bf16 %v182_v10, %v179_v42  ;;  %v11970_v21 = vsub.f32 %v11952_v3, %v182_v10  ;;  %v11972_v22 = vpack.c.bf16 %v800_v11, %v797_v43  ;;  %v11975_v23 = vsub.f32 %v11954_v4, %v800_v11 }
  0xa4   :  { %v917_v43 = vsub.f32 %v11939_v52, %v916_v16 }
  0xa5   :  { %10597 = vmatprep.subr.bf16.mxu0 %v11967_v20  ;;  %10645 = vmatprep.subr.bf16.mxu1 %v11972_v22  ;;  %v305_v42 = vand.u32 4294901760, %v11970_v21  ;;  %v923_v45 = vand.u32 4294901760, %v11975_v23  ;;  %v10612_v50 = vpack.c.bf16 %v11970_v21, %v11936_v47  ;;  %v10660_v10 = vpack.c.bf16 %v11975_v23, %v11939_v52 }
  0xa6   :  { %10599 = vmatpush3.bf16.msra.mxu0 %v11967_v20  ;;  %10647 = vmatpush3.bf16.msra.mxu1 %v11972_v22  ;;  %v918_v60 = vand.u32 4294901760, %v917_v43 }
  0xa7   :  { %10601 = vmatprep.subr.bf16.mxu0 %v10600_v24  ;;  %10649 = vmatprep.subr.bf16.mxu1 %v10648_v25  ;;  %v306_v56 = vsub.f32 %v11970_v21, %v305_v42  ;;  %v924_v57 = vsub.f32 %v11975_v23, %v923_v45  ;;  %v10628_v30 = vpack.c.bf16 %v305_v42, %v298_v15 }
  0xa8   :  { %v10676_v32 = vpack.c.bf16 %v923_v45, %v916_v16 }
  0xa9   :  { %9461 = vmatmul.mubr.f32.vlgmr.msra.gmra.mrb[0].mxu0 %v255_v26  ;;  %9545 = vmatmul.mubr.f32.vlgmr.msra.gmra.mrb[0].mxu1 %v255_v26  ;;  %v307_v46 = vand.u32 4294901760, %v306_v56  ;;  %v925_v63 = vand.u32 4294901760, %v924_v57 }
  0xaa   :  { %10603 = vmatpush3.bf16.msra.mxu0 %v10600_v24  ;;  %10651 = vmatpush3.bf16.msra.mxu1 %v10648_v25 }
  0xab   :  { %9463 = vmatprep.mubr.f32.mxu0 %v265_v48  ;;  %9547 = vmatprep.mubr.f32.mxu1 %v265_v48  ;;  %v10604_v0 = vpack.c.bf16 %v307_v46, %v300_v59  ;;  %v10652_v1 = vpack.c.bf16 %v925_v63, %v918_v60 }
  0xad   :  { %9464 = vmatmul.mubr.f32.gmra.mrb[2].mxu0 %v275_v58  ;;  %10605 = vmatprep.subr.bf16.mxu0 %v10604_v0 }
  0xae   :  { %9548 = vmatmul.mubr.f32.gmra.mrb[2].mxu1 %v275_v58  ;;  %10653 = vmatprep.subr.bf16.mxu1 %v10652_v1 }
  0xaf   :  { %10607 = vmatpush3.bf16.msra.mxu0 %v10604_v0  ;;  %10655 = vmatpush3.bf16.msra.mxu1 %v10652_v1 }
  0xb0   :  { %10609 = vmatprep.subr.bf16.mxu0 %v10608_v5  ;;  %10657 = vmatprep.subr.bf16.mxu1 %v10656_v6 }
  0xb1   :  { %9474 = vmatprep.mubr.f32.mxu0 %v11738_v12  ;;  %9558 = vmatprep.mubr.f32.mxu1 %v11738_v12 }
  0xb2   :  { %9475 = vmatmul.mubr.f32.vlgmr.msra.gmra.mrb[0].mxu0 %v11866_v9  ;;  %9559 = vmatmul.mubr.f32.vlgmr.msra.gmra.mrb[0].mxu1 %v11866_v9 }
  0xb3   :  { %10611 = vmatpush3.bf16.msra.mxu0 %v10608_v5  ;;  %10659 = vmatpush3.bf16.msra.mxu1 %v10656_v6 }
  0xb4   :  { %10613 = vmatprep.subr.bf16.mxu0 %v10612_v50  ;;  %10661 = vmatprep.subr.bf16.mxu1 %v10660_v10 }
  0xb5   :  { %9477 = vmatprep.mubr.f32.mxu0 %v11880_v27  ;;  %9561 = vmatprep.mubr.f32.mxu1 %v11880_v27 }
  0xb6   :  { %9478 = vmatmul.mubr.f32.gmra.mrb[2].mxu0 %v11908_v39  ;;  %9562 = vmatmul.mubr.f32.gmra.mrb[2].mxu1 %v11908_v39 }
  0xb7   :  { %10615 = vmatpush3.bf16.msra.mxu0 %v10612_v50  ;;  %10663 = vmatpush3.bf16.msra.mxu1 %v10660_v10 }
  0xb8   :  { %10617 = vmatprep.subr.bf16.mxu0 %v11883_v29  ;;  %10665 = vmatprep.subr.bf16.mxu1 %v11888_v31 }
  0xb9   :  { %9488 = vmatprep.mubr.f32.mxu0 %v11741_v13  ;;  %9572 = vmatprep.mubr.f32.mxu1 %v11741_v13  ;;  %v10624_v13 = vpack.c.bf16 %v291_v49, %v284_v40  ;;  %v1410_v40 = vld [vmem:[%s13150_s1 + $0x50] sm:$0xff] }
  0xba   :  { %9489 = vmatmul.mubr.f32.vlgmr.msra.gmra.mrb[0].mxu0 %v11906_v38  ;;  %9573 = vmatmul.mubr.f32.vlgmr.msra.gmra.mrb[0].mxu1 %v11906_v38  ;;  %v10672_v38 = vpack.c.bf16 %v909_v53, %v902_v41  ;;  %v1411_v41 = vld [vmem:[%s13150_s1 + $0x58] sm:$0xff]  ;;  %v1443_v53 = vsel %vm159_vm0, %v1410_v40, 0 }
  0xbb   :  { %10619 = vmatpush3.bf16.msra.mxu0 %v11883_v29  ;;  %10667 = vmatpush3.bf16.msra.mxu1 %v11888_v31 }
  0xbc   :  { %10621 = vmatprep.subr.bf16.mxu0 %v11967_v20  ;;  %10669 = vmatprep.subr.bf16.mxu1 %v11972_v22 }
  0xbd   :  { %9491 = vmatprep.mubr.f32.mxu0 %v11917_v44  ;;  %9575 = vmatprep.mubr.f32.mxu1 %v11917_v44  ;;  %v152_v44 = vpop.permute.xlu1 %151 }
  0xbe   :  { %9492 = vmatmul.mubr.f32.gmra.mrb[2].mxu0 %v11927_v55  ;;  %9576 = vmatmul.mubr.f32.gmra.mrb[2].mxu1 %v11927_v55  ;;  %v147_v55 = vpop.permute.xlu0 %146 }
  0xbf   :  { %10623 = vmatpush3.bf16.msra.mxu0 %v11967_v20  ;;  %10671 = vmatpush3.bf16.msra.mxu1 %v11972_v22 }
  0xc0   :  { %10625 = vmatprep.subr.bf16.mxu0 %v10624_v13  ;;  %10673 = vmatprep.subr.bf16.mxu1 %v10672_v38 }
  0xc1   :  { %9502 = vmatprep.mubr.f32.mxu0 %v11744_v14  ;;  %9586 = vmatprep.mubr.f32.mxu1 %v11744_v14  ;;  %v1408_v14 = vld [vmem:[%s13150_s1 + $0x40] sm:$0xff]  ;;  %v157_v21 = vpop.permute.xlu1 %156 }
  0xc2   :  { %9503 = vmatmul.mubr.f32.vlgmr.msra.gmra.mrb[0].mxu0 %v11924_v54  ;;  %9587 = vmatmul.mubr.f32.vlgmr.msra.gmra.mrb[0].mxu1 %v11924_v54  ;;  %v1446_v54 = vsel %vm159_vm0, %v1411_v41, 0 }
  0xc3   :  { %10627 = vmatpush3.bf16.msra.mxu0 %v10624_v13  ;;  %10675 = vmatpush3.bf16.msra.mxu1 %v10672_v38  ;;  %v12107_v18 = vand.u32 4294901760, %v1446_v54 }
  0xc4   :  { %10629 = vmatprep.subr.bf16.mxu0 %v10628_v30  ;;  %10677 = vmatprep.subr.bf16.mxu1 %v10676_v32 }
  0xc5   :  { %9505 = vmatprep.mubr.f32.mxu0 %v11950_v2  ;;  %9589 = vmatprep.mubr.f32.mxu1 %v11950_v2  ;;  %v12116_v43 = vsub.f32 %v1446_v54, %v12107_v18 }
  0xc6   :  { %9506 = vmatmul.mubr.f32.gmra.mrb[2].mxu0 %v11959_v51  ;;  %9590 = vmatmul.mubr.f32.gmra.mrb[2].mxu1 %v11959_v51  ;;  %v12105_v51 = vand.u32 4294901760, %v1443_v53 }
  0xc7   :  { %10631 = vmatpush3.bf16.msra.mxu0 %v10628_v30  ;;  %10679 = vmatpush3.bf16.msra.mxu1 %v10676_v32  ;;  %v12125_v58 = vand.u32 4294901760, %v12116_v43 }
  0xc8   :  { %10633 = vmatprep.subr.bf16.mxu0 %v11883_v29  ;;  %10681 = vmatprep.subr.bf16.mxu1 %v11888_v31  ;;  %v12113_v25 = vsub.f32 %v1443_v53, %v12105_v51 }
  0xc9   :  { %9516 = vmatprep.mubr.f32.mxu0 %v11738_v12  ;;  %9600 = vmatprep.mubr.f32.mxu1 %v11738_v12  ;;  %v1550_v63 = vsub.f32 %v12116_v43, %v12125_v58 }
  0xca   :  { %9517 = vmatmul.mubr.f32.vlgmr.msra.gmra.mrb[0].mxu0 %v11866_v9  ;;  %9601 = vmatmul.mubr.f32.vlgmr.msra.gmra.mrb[0].mxu1 %v11866_v9  ;;  %v12122_v57 = vand.u32 4294901760, %v12113_v25 }
  0xcb   :  { %10635 = vmatpush3.bf16.msra.mxu0 %v11883_v29  ;;  %10683 = vmatpush3.bf16.msra.mxu1 %v11888_v31  ;;  %v1437_v29 = vsel %vm159_vm0, %v1408_v14, 0 }
  0xcc   :  { %10637 = vmatprep.subr.bf16.mxu0 %v11967_v20  ;;  %10685 = vmatprep.subr.bf16.mxu1 %v11972_v22  ;;  %v12081_v31 = vand.u32 4294901760, %v1437_v29  ;;  %v1540_v60 = vsub.f32 %v12113_v25, %v12122_v57 }
  0xcd   :  { %9519 = vmatprep.mubr.f32.mxu0 %v11880_v27  ;;  %9603 = vmatprep.mubr.f32.mxu1 %v11880_v27 }
  0xce   :  { %9520 = vmatmul.mubr.f32.gmra.mrb[2].mxu0 %v11908_v39  ;;  %9604 = vmatmul.mubr.f32.gmra.mrb[2].mxu1 %v11908_v39 }
  0xcf   :  { %10639 = vmatpush3.bf16.msra.mxu0 %v11967_v20  ;;  %10687 = vmatpush3.bf16.msra.mxu1 %v11972_v22 }
  0xd0   :  { %9530 = vmatprep.mubr.f32.mxu0 %v11738_v12  ;;  %9614 = vmatprep.mubr.f32.mxu1 %v11738_v12  ;;  %v12084_v12 = vsub.f32 %v1437_v29, %v12081_v31  ;;  %v12139_v29 = vand.u32 4294901760, %v1540_v60 }
  0xd2   :  { %9531 = vmatmul.mubr.f32.vlgmr.msra.gmra.mrb[0].mxu0 %v11866_v9  ;;  %9615 = vmatmul.mubr.f32.vlgmr.msra.gmra.mrb[0].mxu1 %v11866_v9  ;;  %v12087_v9 = vand.u32 4294901760, %v12084_v12 }
  0xd3   :  { %9533 = vmatprep.mubr.f32.mxu0 %v11880_v27  ;;  %9617 = vmatprep.mubr.f32.mxu1 %v11880_v27 }
  0xd4   :  { %v1520_v27 = vsub.f32 %v12084_v12, %v12087_v9 }
  0xd6   :  { %9534 = vmatmul.mubr.f32.gmra.mrb[2].mxu0 %v11908_v39  ;;  %9618 = vmatmul.mubr.f32.gmra.mrb[2].mxu1 %v11908_v39  ;;  %v1521_v33 = vand.u32 4294901760, %v1520_v27  ;;  %v1409_v39 = vld [vmem:[%s13150_s1 + $0x48] sm:$0xff]  ;;  %v12141_v27 = vand.u32 4294901760, %v1550_v63 }
  0xd7   :  { %v1440_v49 = vsel %vm159_vm0, %v1409_v39, 0 }
  0xd8   :  { %9628 = vmatprep.mubr.f32.mxu0 %v1521_v33  ;;  %9712 = vmatprep.mubr.f32.mxu1 %v1521_v33  ;;  %v12103_v2 = vand.u32 4294901760, %v1440_v49 }
  0xda   :  { %v12110_v24 = vsub.f32 %v1440_v49, %v12103_v2 }
  0xdc   :  { %v12119_v56 = vand.u32 4294901760, %v12110_v24 }
  0xde   :  { %v1530_v59 = vsub.f32 %v12110_v24, %v12119_v56 }
  0xe0   :  { %v12133_v13 = vand.u32 4294901760, %v1530_v59 }
 0x1a5   :  { %v9532_v47 = vpop.f32.mrb[0].mxu0  ;;  %v9616_v52 = vpop.f32.mrb[0].mxu1 }
 0x1a6   :  { %v11240_v11 = vadd.f32 %v9532_v47, %v147_v55  ;;  %v11244_v15 = vadd.f32 %v9616_v52, %v147_v55  ;;  %v764_v16 = vpop.f32.mrb[1].mxu0  ;;  %v1382_v17 = vpop.f32.mrb[1].mxu1 }
 0x1a7   :  { %v11241_v19 = vadd.f32 %v764_v16, %v142_v34  ;;  %v11245_v20 = vadd.f32 %v1382_v17, %v142_v34 }
 0x1a8   :  { %11564 = vtanh.f32 %v11240_v11 }
 0x1a9   :  { %11566 = vtanh.f32 %v11244_v15  ;;  %v9535_v22 = vpop.f32.mrb[2].mxu0  ;;  %v9619_v23 = vpop.f32.mrb[2].mxu1 }
 0x1aa   :  { %11568 = vtanh.f32 %v11241_v19  ;;  %v11242_v26 = vadd.f32 %v9535_v22, %v157_v21  ;;  %v11246_v28 = vadd.f32 %v9619_v23, %v157_v21  ;;  %v776_v37 = vpop.f32.mrb[3].mxu0  ;;  %v1394_v42 = vpop.f32.mrb[3].mxu1 }
 0x1ab   :  { %11570 = vtanh.f32 %v11245_v20  ;;  %v11243_v45 = vadd.f32 %v776_v37, %v152_v44  ;;  %v11247_v48 = vadd.f32 %v1394_v42, %v152_v44 }
 0x1ac   :  { %11572 = vtanh.f32 %v11242_v26 }
 0x1ad   :  { %11574 = vtanh.f32 %v11246_v28 }
 0x1ae   :  { %11576 = vtanh.f32 %v11243_v45 }
 0x1af   :  { %11578 = vtanh.f32 %v11247_v48 }
 0x1b2   :  { %v11565_v46 = vpop.eup %11564 }
 0x1b3   :  { %v11567_v0 = vpop.eup %11566  ;;  %v1452_v1 = vand.u32 4294901760, %v11565_v46 }
 0x1b4   :  { %v11569_v5 = vpop.eup %11568  ;;  %v2066_v6 = vand.u32 4294901760, %v11567_v0 }
 0x1b5   :  { %v11571_v50 = vpop.eup %11570  ;;  %v1449_v10 = vand.u32 4294901760, %v11569_v5  ;;  %v12135_v38 = vsub.f32 %v11565_v46, %v1452_v1 }
 0x1b6   :  { %v11573_v30 = vpop.eup %11572  ;;  %v2063_v32 = vand.u32 4294901760, %v11571_v50  ;;  %v12137_v14 = vsub.f32 %v11567_v0, %v2066_v6 }
 0x1b7   :  { %v11575_v33 = vpop.eup %11574  ;;  %v12143_v34 = vpack.c.bf16 %v1452_v1, %v1449_v10  ;;  %v1458_v39 = vand.u32 4294901760, %v11573_v30  ;;  %v1559_v40 = vsub.f32 %v11569_v5, %v1449_v10  ;;  %v1567_v41 = vand.u32 4294901760, %v12135_v38 }
 0x1b8   :  { %v11577_v44 = vpop.eup %11576  ;;  %v12146_v49 = vpack.c.bf16 %v2066_v6, %v2063_v32  ;;  %v2072_v53 = vand.u32 4294901760, %v11575_v33  ;;  %v2173_v54 = vsub.f32 %v11571_v50, %v2063_v32  ;;  %v2181_v55 = vand.u32 4294901760, %v12137_v14 }
 0x1b9   :  { %v11579_v47 = vpop.eup %11578  ;;  %v1455_v52 = vand.u32 4294901760, %v11577_v44  ;;  %10689 = vmatprep.subr.bf16.mxu0 %v12143_v34  ;;  %v1560_v11 = vand.u32 4294901760, %v1559_v40  ;;  %v1568_v15 = vsub.f32 %v12135_v38, %v1567_v41  ;;  %v1580_v16 = vsub.f32 %v11573_v30, %v1458_v39 }
 0x1ba   :  { %v2069_v17 = vand.u32 4294901760, %v11579_v47  ;;  %10737 = vmatprep.subr.bf16.mxu1 %v12146_v49  ;;  %10691 = vmatpush3.bf16.msra.mxu0 %v12143_v34  ;;  %v2174_v19 = vand.u32 4294901760, %v2173_v54  ;;  %v2182_v20 = vsub.f32 %v12137_v14, %v2181_v55  ;;  %v2194_v21 = vsub.f32 %v11575_v33, %v2072_v53 }
 0x1bb   :  { %v12154_v22 = vpack.c.bf16 %v1458_v39, %v1455_v52  ;;  %10739 = vmatpush3.bf16.msra.mxu1 %v12146_v49  ;;  %v1561_v23 = vsub.f32 %v1559_v40, %v1560_v11  ;;  %v1569_v26 = vand.u32 4294901760, %v1568_v15  ;;  %v1573_v28 = vsub.f32 %v11577_v44, %v1455_v52 }
 0x1bc   :  { %v12157_v37 = vpack.c.bf16 %v2072_v53, %v2069_v17  ;;  %v2175_v42 = vsub.f32 %v2173_v54, %v2174_v19  ;;  %v2183_v45 = vand.u32 4294901760, %v2182_v20  ;;  %v1581_v48 = vand.u32 4294901760, %v1580_v16 }
 0x1bd   :  { %10693 = vmatprep.subr.bf16.mxu0 %v12154_v22  ;;  %v1562_v59 = vand.u32 4294901760, %v1561_v23  ;;  %v1574_v46 = vand.u32 4294901760, %v1573_v28  ;;  %v2187_v60 = vsub.f32 %v11579_v47, %v2069_v17  ;;  %v2195_v63 = vand.u32 4294901760, %v2194_v21 }
 0x1be   :  { %10741 = vmatprep.subr.bf16.mxu1 %v12157_v37  ;;  %10695 = vmatpush3.bf16.msra.mxu0 %v12154_v22  ;;  %v2176_v0 = vand.u32 4294901760, %v2175_v42  ;;  %v1582_v1 = vsub.f32 %v1580_v16, %v1581_v48  ;;  %v10704_v5 = vpack.c.bf16 %v12135_v38, %v1559_v40  ;;  %v10752_v6 = vpack.c.bf16 %v12137_v14, %v2173_v54 }
 0x1bf   :  { %10743 = vmatpush3.bf16.msra.mxu1 %v12157_v37  ;;  %v10696_v50 = vpack.c.bf16 %v1569_v26, %v1562_v59  ;;  %v1575_v10 = vsub.f32 %v1573_v28, %v1574_v46  ;;  %v2188_v30 = vand.u32 4294901760, %v2187_v60  ;;  %v2196_v32 = vsub.f32 %v2194_v21, %v2195_v63 }
 0x1c0   :  { %v10744_v33 = vpack.c.bf16 %v2183_v45, %v2176_v0  ;;  %v1583_v39 = vand.u32 4294901760, %v1582_v1  ;;  %v10708_v44 = vpack.c.bf16 %v1580_v16, %v1573_v28  ;;  %v10756_v53 = vpack.c.bf16 %v2194_v21, %v2187_v60 }
 0x1c1   :  { %9629 = vmatmul.mubr.f32.vlgmr.msra.gmra.mrb[4].mxu0 %v12133_v13  ;;  %10697 = vmatprep.subr.bf16.mxu0 %v10696_v50  ;;  %v1576_v47 = vand.u32 4294901760, %v1575_v10  ;;  %v2189_v52 = vsub.f32 %v2187_v60, %v2188_v30  ;;  %v2197_v15 = vand.u32 4294901760, %v2196_v32  ;;  %v10720_v17 = vpack.c.bf16 %v1567_v41, %v1560_v11 }
 0x1c2   :  { %9713 = vmatmul.mubr.f32.vlgmr.msra.gmra.mrb[4].mxu1 %v12133_v13  ;;  %10745 = vmatprep.subr.bf16.mxu1 %v10744_v33  ;;  %v10768_v38 = vpack.c.bf16 %v2181_v55, %v2174_v19  ;;  %v10724_v14 = vpack.c.bf16 %v1581_v48, %v1574_v46  ;;  %v10772_v40 = vpack.c.bf16 %v2195_v63, %v2188_v30  ;;  %v2694_v13 = vld [vmem:[%s13150_s1 + $0x70] sm:$0xff] }
 0x1c3   :  { %10699 = vmatpush3.bf16.msra.mxu0 %v10696_v50  ;;  %10747 = vmatpush3.bf16.msra.mxu1 %v10744_v33  ;;  %v10700_v54 = vpack.c.bf16 %v1583_v39, %v1576_v47  ;;  %v2190_v20 = vand.u32 4294901760, %v2189_v52  ;;  %v2727_v26 = vsel %vm159_vm0, %v2694_v13, 0 }
 0x1c4   :  { %9631 = vmatprep.mubr.f32.mxu0 %v12139_v29  ;;  %9715 = vmatprep.mubr.f32.mxu1 %v12139_v29 }
 0x1c5   :  { %9632 = vmatmul.mubr.f32.gmra.mrb[6].mxu0 %v12141_v27  ;;  %10701 = vmatprep.subr.bf16.mxu0 %v10700_v54  ;;  %v10748_v16 = vpack.c.bf16 %v2197_v15, %v2190_v20 }
 0x1c6   :  { %9716 = vmatmul.mubr.f32.gmra.mrb[6].mxu1 %v12141_v27  ;;  %9642 = vmatprep.mubr.f32.mxu0 %v12081_v31 }
 0x1c7   :  { %10749 = vmatprep.subr.bf16.mxu1 %v10748_v16  ;;  %10703 = vmatpush3.bf16.msra.mxu0 %v10700_v54 }
 0x1c8   :  { %10751 = vmatpush3.bf16.msra.mxu1 %v10748_v16  ;;  %10705 = vmatprep.subr.bf16.mxu0 %v10704_v5 }
 0x1c9   :  { %10753 = vmatprep.subr.bf16.mxu1 %v10752_v6  ;;  %9726 = vmatprep.mubr.f32.mxu1 %v12081_v31 }
 0x1ca   :  { %9643 = vmatmul.mubr.f32.vlgmr.msra.gmra.mrb[4].mxu0 %v12103_v2 }
 0x1cb   :  { %9727 = vmatmul.mubr.f32.vlgmr.msra.gmra.mrb[4].mxu1 %v12103_v2  ;;  %10707 = vmatpush3.bf16.msra.mxu0 %v10704_v5 }
 0x1cc   :  { %10755 = vmatpush3.bf16.msra.mxu1 %v10752_v6  ;;  %10709 = vmatprep.subr.bf16.mxu0 %v10708_v44  ;;  %v12262_v6 = vand.u32 4294901760, %v2727_v26 }
 0x1cd   :  { %10757 = vmatprep.subr.bf16.mxu1 %v10756_v53  ;;  %9645 = vmatprep.mubr.f32.mxu0 %v12105_v51 }
 0x1ce   :  { %9729 = vmatprep.mubr.f32.mxu1 %v12105_v51  ;;  %9646 = vmatmul.mubr.f32.gmra.mrb[6].mxu0 %v12107_v18  ;;  %v12274_v33 = vsub.f32 %v2727_v26, %v12262_v6 }
 0x1cf   :  { %9730 = vmatmul.mubr.f32.gmra.mrb[6].mxu1 %v12107_v18  ;;  %10711 = vmatpush3.bf16.msra.mxu0 %v10708_v44 }
 0x1d0   :  { %10759 = vmatpush3.bf16.msra.mxu1 %v10756_v53  ;;  %10713 = vmatprep.subr.bf16.mxu0 %v12143_v34 }
 0x1d1   :  { %10761 = vmatprep.subr.bf16.mxu1 %v12146_v49  ;;  %9656 = vmatprep.mubr.f32.mxu0 %v12084_v12 }
 0x1d2   :  { %9740 = vmatprep.mubr.f32.mxu1 %v12084_v12  ;;  %9657 = vmatmul.mubr.f32.vlgmr.msra.gmra.mrb[4].mxu0 %v12110_v24  ;;  %v2692_v12 = vld [vmem:[%s13150_s1 + $0x60] sm:$0xff] }
 0x1d3   :  { %9741 = vmatmul.mubr.f32.vlgmr.msra.gmra.mrb[4].mxu1 %v12110_v24  ;;  %10715 = vmatpush3.bf16.msra.mxu0 %v12143_v34 }
 0x1d4   :  { %10763 = vmatpush3.bf16.msra.mxu1 %v12146_v49  ;;  %10717 = vmatprep.subr.bf16.mxu0 %v12154_v22 }
 0x1d5   :  { %10765 = vmatprep.subr.bf16.mxu1 %v12157_v37  ;;  %9659 = vmatprep.mubr.f32.mxu0 %v12113_v25 }
 0x1d6   :  { %9743 = vmatprep.mubr.f32.mxu1 %v12113_v25  ;;  %9660 = vmatmul.mubr.f32.gmra.mrb[6].mxu0 %v12116_v43 }
 0x1d7   :  { %9744 = vmatmul.mubr.f32.gmra.mrb[6].mxu1 %v12116_v43  ;;  %10719 = vmatpush3.bf16.msra.mxu0 %v12154_v22  ;;  %v1419_v43 = vpop.permute.xlu0 %1418 }
 0x1d8   :  { %10767 = vmatpush3.bf16.msra.mxu1 %v12157_v37  ;;  %10721 = vmatprep.subr.bf16.mxu0 %v10720_v17 }
 0x1d9   :  { %10769 = vmatprep.subr.bf16.mxu1 %v10768_v38  ;;  %9670 = vmatprep.mubr.f32.mxu0 %v12087_v9 }
 0x1da   :  { %9754 = vmatprep.mubr.f32.mxu1 %v12087_v9  ;;  %9671 = vmatmul.mubr.f32.vlgmr.msra.gmra.mrb[4].mxu0 %v12119_v56  ;;  %v2721_v9 = vsel %vm159_vm0, %v2692_v12, 0 }
 0x1db   :  { %9755 = vmatmul.mubr.f32.vlgmr.msra.gmra.mrb[4].mxu1 %v12119_v56  ;;  %10723 = vmatpush3.bf16.msra.mxu0 %v10720_v17  ;;  %v12231_v24 = vand.u32 4294901760, %v2721_v9  ;;  %v1424_v56 = vpop.permute.xlu1 %1423  ;;  %v1429_v21 = vpop.permute.xlu0 %1428 }
 0x1dc   :  { %10771 = vmatpush3.bf16.msra.mxu1 %v10768_v38  ;;  %10725 = vmatprep.subr.bf16.mxu0 %v10724_v14 }
 0x1dd   :  { %10773 = vmatprep.subr.bf16.mxu1 %v10772_v40  ;;  %9673 = vmatprep.mubr.f32.mxu0 %v12122_v57 }
 0x1de   :  { %9757 = vmatprep.mubr.f32.mxu1 %v12122_v57  ;;  %9674 = vmatmul.mubr.f32.gmra.mrb[6].mxu0 %v12125_v58 }
 0x1df   :  { %9758 = vmatmul.mubr.f32.gmra.mrb[6].mxu1 %v12125_v58  ;;  %10727 = vmatpush3.bf16.msra.mxu0 %v10724_v14  ;;  %v1434_v28 = vpop.permute.xlu1 %1433 }
 0x1e0   :  { %10775 = vmatpush3.bf16.msra.mxu1 %v10772_v40  ;;  %10729 = vmatprep.subr.bf16.mxu0 %v12143_v34 }
 0x1e1   :  { %10777 = vmatprep.subr.bf16.mxu1 %v12146_v49  ;;  %9684 = vmatprep.mubr.f32.mxu0 %v12081_v31 }
 0x1e2   :  { %9768 = vmatprep.mubr.f32.mxu1 %v12081_v31  ;;  %9685 = vmatmul.mubr.f32.vlgmr.msra.gmra.mrb[4].mxu0 %v12103_v2 }
 0x1e3   :  { %9769 = vmatmul.mubr.f32.vlgmr.msra.gmra.mrb[4].mxu1 %v12103_v2  ;;  %10731 = vmatpush3.bf16.msra.mxu0 %v12143_v34 }
 0x1e4   :  { %10779 = vmatpush3.bf16.msra.mxu1 %v12146_v49  ;;  %10733 = vmatprep.subr.bf16.mxu0 %v12154_v22  ;;  %v2695_v49 = vld [vmem:[%s13150_s1 + $0x78] sm:$0xff] }
 0x1e5   :  { %10781 = vmatprep.subr.bf16.mxu1 %v12157_v37  ;;  %9687 = vmatprep.mubr.f32.mxu0 %v12105_v51  ;;  %v2730_v48 = vsel %vm159_vm0, %v2695_v49, 0 }
 0x1e6   :  { %9771 = vmatprep.mubr.f32.mxu1 %v12105_v51  ;;  %9688 = vmatmul.mubr.f32.gmra.mrb[6].mxu0 %v12107_v18  ;;  %v12265_v50 = vand.u32 4294901760, %v2730_v48 }
 0x1e7   :  { %9772 = vmatmul.mubr.f32.gmra.mrb[6].mxu1 %v12107_v18  ;;  %10735 = vmatpush3.bf16.msra.mxu0 %v12154_v22 }
 0x1e8   :  { %10783 = vmatpush3.bf16.msra.mxu1 %v12157_v37  ;;  %9698 = vmatprep.mubr.f32.mxu0 %v12081_v31 }
 0x1e9   :  { %9782 = vmatprep.mubr.f32.mxu1 %v12081_v31  ;;  %v12234_v31 = vsub.f32 %v2721_v9, %v12231_v24 }
 0x1ea   :  { %9699 = vmatmul.mubr.f32.vlgmr.msra.gmra.mrb[4].mxu0 %v12103_v2 }
 0x1eb   :  { %9783 = vmatmul.mubr.f32.vlgmr.msra.gmra.mrb[4].mxu1 %v12103_v2  ;;  %9701 = vmatprep.mubr.f32.mxu0 %v12105_v51  ;;  %v12237_v2 = vand.u32 4294901760, %v12234_v31 }
 0x1ec   :  { %9785 = vmatprep.mubr.f32.mxu1 %v12105_v51 }
 0x1ed   :  { %v2804_v51 = vsub.f32 %v12234_v31, %v12237_v2 }
 0x1ee   :  { %9702 = vmatmul.mubr.f32.gmra.mrb[6].mxu0 %v12107_v18 }
 0x1ef   :  { %9786 = vmatmul.mubr.f32.gmra.mrb[6].mxu1 %v12107_v18  ;;  %v2805_v25 = vand.u32 4294901760, %v2804_v51  ;;  %v2693_v18 = vld [vmem:[%s13150_s1 + $0x68] sm:$0xff] }
 0x1f0   :  { %v2724_v57 = vsel %vm159_vm0, %v2693_v18, 0 }
 0x1f1   :  { %9796 = vmatprep.mubr.f32.mxu0 %v2805_v25  ;;  %9880 = vmatprep.mubr.f32.mxu1 %v2805_v25  ;;  %v12248_v41 = vand.u32 4294901760, %v2724_v57 }
 0x1f3   :  { %v12260_v0 = vsub.f32 %v2724_v57, %v12248_v41 }
 0x1f5   :  { %v12271_v32 = vand.u32 4294901760, %v12260_v0 }
 0x2bd   :  { %v9700_v58 = vpop.f32.mrb[4].mxu0 }
 0x2be   :  { %v11248_v29 = vadd.f32 %v9700_v58, %v1424_v56  ;;  %v9784_v27 = vpop.f32.mrb[4].mxu1  ;;  %v2040_v34 = vpop.f32.mrb[5].mxu0 }
 0x2bf   :  { %v11252_v55 = vadd.f32 %v9784_v27, %v1424_v56  ;;  %v11249_v11 = vadd.f32 %v2040_v34, %v1419_v43  ;;  %v2654_v19 = vpop.f32.mrb[5].mxu1 }
 0x2c0   :  { %v2677_v22 = vadd.f32 %v11248_v29, %v11852_v61  ;;  %v11253_v23 = vadd.f32 %v2654_v19, %v1419_v43 }
 0x2c1   :  { %v2685_v37 = vadd.f32 %v11252_v55, %v11854_v62  ;;  %v2676_v42 = vadd.f32 %v11249_v11, %v11862_v7  ;;  %v9703_v45 = vpop.f32.mrb[6].mxu0 }
 0x2c2   :  { %11580 = vtanh.f32 %v2677_v22  ;;  %v2684_v59 = vadd.f32 %v11253_v23, %v11864_v8  ;;  %v11250_v46 = vadd.f32 %v9703_v45, %v1434_v28  ;;  %v9787_v60 = vpop.f32.mrb[6].mxu1  ;;  %v2052_v63 = vpop.f32.mrb[7].mxu0 }
 0x2c3   :  { %11582 = vtanh.f32 %v2685_v37  ;;  %v11254_v61 = vadd.f32 %v9787_v60, %v1434_v28  ;;  %v11251_v1 = vadd.f32 %v2052_v63, %v1429_v21  ;;  %v2666_v5 = vpop.f32.mrb[7].mxu1 }
 0x2c4   :  { %11584 = vtanh.f32 %v2676_v42  ;;  %v2679_v62 = vadd.f32 %v11250_v46, %v11952_v3  ;;  %v11255_v7 = vadd.f32 %v2666_v5, %v1429_v21  ;;  %v12277_v3 = vsub.f32 %v2730_v48, %v12265_v50 }
 0x2c5   :  { %11586 = vtanh.f32 %v2684_v59  ;;  %v2687_v8 = vadd.f32 %v11254_v61, %v11954_v4  ;;  %v2678_v10 = vadd.f32 %v11251_v1, %v11899_v35  ;;  %v2814_v4 = vsub.f32 %v12260_v0, %v12271_v32 }
 0x2c6   :  { %11588 = vtanh.f32 %v2679_v62  ;;  %v2686_v30 = vadd.f32 %v11255_v7, %v11901_v36  ;;  %v12284_v35 = vand.u32 4294901760, %v12274_v33  ;;  %v12287_v36 = vand.u32 4294901760, %v12277_v3 }
 0x2c7   :  { %11590 = vtanh.f32 %v2687_v8  ;;  %v2815_v38 = vand.u32 4294901760, %v2814_v4 }
 0x2c8   :  { %11592 = vtanh.f32 %v2678_v10  ;;  %v2824_v16 = vsub.f32 %v12274_v33, %v12284_v35  ;;  %v2834_v12 = vsub.f32 %v12277_v3, %v12287_v36 }
 0x2c9   :  { %11594 = vtanh.f32 %v2686_v30 }
 0x2cc   :  { %v12281_v39 = vpop.eup %11580 }
 0x2cd   :  { %v12289_v44 = vpop.eup %11582  ;;  %v2736_v53 = vand.u32 4294901760, %v12281_v39 }
 0x2ce   :  { %v12292_v47 = vpop.eup %11584  ;;  %v3354_v52 = vand.u32 4294901760, %v12289_v44 }
 0x2cf   :  { %v12295_v15 = vpop.eup %11586  ;;  %v2733_v17 = vand.u32 4294901760, %v12292_v47  ;;  %v12299_v14 = vsub.f32 %v12281_v39, %v2736_v53 }
 0x2d0   :  { %v12301_v40 = vpop.eup %11588  ;;  %v3351_v54 = vand.u32 4294901760, %v12295_v15  ;;  %v12305_v20 = vsub.f32 %v12289_v44, %v3354_v52 }
 0x2d1   :  { %v12311_v9 = vpop.eup %11590  ;;  %v12313_v51 = vpack.c.bf16 %v2736_v53, %v2733_v17  ;;  %v2742_v25 = vand.u32 4294901760, %v12301_v40  ;;  %v12317_v18 = vsub.f32 %v12292_v47, %v2733_v17  ;;  %v2851_v43 = vand.u32 4294901760, %v12299_v14 }
 0x2d2   :  { %v12320_v56 = vpop.eup %11592  ;;  %v12322_v57 = vpack.c.bf16 %v3354_v52, %v3351_v54  ;;  %v3360_v58 = vand.u32 4294901760, %v12311_v9  ;;  %v12326_v13 = vsub.f32 %v12295_v15, %v3351_v54  ;;  %v3469_v29 = vand.u32 4294901760, %v12305_v20 }
 0x2d3   :  { %v12329_v27 = vpop.eup %11594  ;;  %10785 = vmatprep.subr.bf16.mxu0 %v12313_v51  ;;  %v2739_v34 = vand.u32 4294901760, %v12320_v56  ;;  %v2844_v49 = vand.u32 4294901760, %v12317_v18  ;;  %v2852_v55 = vsub.f32 %v12299_v14, %v2851_v43  ;;  %v12338_v11 = vsub.f32 %v12301_v40, %v2742_v25 }
 0x2d4   :  { %10833 = vmatprep.subr.bf16.mxu1 %v12322_v57  ;;  %10787 = vmatpush3.bf16.msra.mxu0 %v12313_v51  ;;  %v3357_v19 = vand.u32 4294901760, %v12329_v27  ;;  %v3462_v21 = vand.u32 4294901760, %v12326_v13  ;;  %v3470_v22 = vsub.f32 %v12305_v20, %v3469_v29  ;;  %v12348_v23 = vsub.f32 %v12311_v9, %v3360_v58 }
 0x2d5   :  { %10835 = vmatpush3.bf16.msra.mxu1 %v12322_v57  ;;  %v12351_v26 = vpack.c.bf16 %v2742_v25, %v2739_v34  ;;  %v2845_v28 = vsub.f32 %v12317_v18, %v2844_v49  ;;  %v2853_v37 = vand.u32 4294901760, %v2852_v55  ;;  %v12357_v42 = vsub.f32 %v12320_v56, %v2739_v34 }
 0x2d6   :  { %v12359_v45 = vpack.c.bf16 %v3360_v58, %v3357_v19  ;;  %v3463_v48 = vsub.f32 %v12326_v13, %v3462_v21  ;;  %v3471_v59 = vand.u32 4294901760, %v3470_v22  ;;  %v2865_v46 = vand.u32 4294901760, %v12338_v11 }
 0x2d7   :  { %10789 = vmatprep.subr.bf16.mxu0 %v12351_v26  ;;  %v2846_v60 = vand.u32 4294901760, %v2845_v28  ;;  %v2858_v63 = vand.u32 4294901760, %v12357_v42  ;;  %v12368_v61 = vsub.f32 %v12329_v27, %v3357_v19  ;;  %v3483_v1 = vand.u32 4294901760, %v12348_v23 }
 0x2d8   :  { %10837 = vmatprep.subr.bf16.mxu1 %v12359_v45  ;;  %10791 = vmatpush3.bf16.msra.mxu0 %v12351_v26  ;;  %v3464_v5 = vand.u32 4294901760, %v3463_v48  ;;  %v2866_v62 = vsub.f32 %v12338_v11, %v2865_v46  ;;  %v2825_v53 = vand.u32 4294901760, %v2824_v16  ;;  %v2835_v17 = vand.u32 4294901760, %v2834_v12 }
 0x2d9   :  { %10839 = vmatpush3.bf16.msra.mxu1 %v12359_v45  ;;  %v10792_v7 = vpack.c.bf16 %v2853_v37, %v2846_v60  ;;  %v2859_v8 = vsub.f32 %v12357_v42, %v2858_v63  ;;  %v3476_v10 = vand.u32 4294901760, %v12368_v61  ;;  %v3484_v30 = vsub.f32 %v12348_v23, %v3483_v1 }
 0x2da   :  { %v10840_v4 = vpack.c.bf16 %v3471_v59, %v3464_v5  ;;  %v2867_v52 = vand.u32 4294901760, %v2866_v62  ;;  %v10800_v12 = vpack.c.bf16 %v12299_v14, %v12317_v18  ;;  %v10804_v19 = vpack.c.bf16 %v12338_v11, %v12357_v42  ;;  %v3970_v14 = vld [vmem:[%s13150_s1 + $0x90] sm:$0xff] }
 0x2db   :  { %9797 = vmatmul.mubr.f32.vlgmr.msra.gmra.mrb[8].mxu0 %v2815_v38  ;;  %10793 = vmatprep.subr.bf16.mxu0 %v10792_v7  ;;  %v2860_v54 = vand.u32 4294901760, %v2859_v8  ;;  %v3477_v25 = vsub.f32 %v12368_v61, %v3476_v10  ;;  %v3485_v58 = vand.u32 4294901760, %v3484_v30  ;;  %v10852_v22 = vpack.c.bf16 %v12348_v23, %v12368_v61 }
 0x2dc   :  { %9881 = vmatmul.mubr.f32.vlgmr.msra.gmra.mrb[8].mxu1 %v2815_v38  ;;  %10841 = vmatprep.subr.bf16.mxu1 %v10840_v4  ;;  %v10848_v38 = vpack.c.bf16 %v12305_v20, %v12326_v13  ;;  %v3971_v20 = vld [vmem:[%s13150_s1 + $0x98] sm:$0xff] }
 0x2dd   :  { %10795 = vmatpush3.bf16.msra.mxu0 %v10792_v7  ;;  %10843 = vmatpush3.bf16.msra.mxu1 %v10840_v4  ;;  %v10796_v34 = vpack.c.bf16 %v2867_v52, %v2860_v54  ;;  %v3478_v55 = vand.u32 4294901760, %v3477_v25  ;;  %v4006_v13 = vsel %vm159_vm0, %v3971_v20, 0 }
 0x2de   :  { %9799 = vmatprep.mubr.f32.mxu0 %v2825_v53  ;;  %9883 = vmatprep.mubr.f32.mxu1 %v2825_v53  ;;  %v12497_v28 = vand.u32 4294901760, %v4006_v13 }
 0x2df   :  { %9800 = vmatmul.mubr.f32.gmra.mrb[10].mxu0 %v2835_v17  ;;  %10797 = vmatprep.subr.bf16.mxu0 %v10796_v34  ;;  %v10844_v16 = vpack.c.bf16 %v3485_v58, %v3478_v55 }
 0x2e0   :  { %9884 = vmatmul.mubr.f32.gmra.mrb[10].mxu1 %v2835_v17  ;;  %9810 = vmatprep.mubr.f32.mxu0 %v12231_v24  ;;  %v12506_v7 = vsub.f32 %v4006_v13, %v12497_v28 }
 0x2e1   :  { %10845 = vmatprep.subr.bf16.mxu1 %v10844_v16  ;;  %10799 = vmatpush3.bf16.msra.mxu0 %v10796_v34 }
 0x2e2   :  { %10847 = vmatpush3.bf16.msra.mxu1 %v10844_v16  ;;  %10801 = vmatprep.subr.bf16.mxu0 %v10800_v12  ;;  %v12515_v17 = vand.u32 4294901760, %v12506_v7 }
 0x2e3   :  { %10849 = vmatprep.subr.bf16.mxu1 %v10848_v38  ;;  %9894 = vmatprep.mubr.f32.mxu1 %v12231_v24 }
 0x2e4   :  { %9811 = vmatmul.mubr.f32.vlgmr.msra.gmra.mrb[8].mxu0 %v12248_v41  ;;  %v4110_v34 = vsub.f32 %v12506_v7, %v12515_v17 }
 0x2e5   :  { %9895 = vmatmul.mubr.f32.vlgmr.msra.gmra.mrb[8].mxu1 %v12248_v41  ;;  %10803 = vmatpush3.bf16.msra.mxu0 %v10800_v12 }
 0x2e6   :  { %10851 = vmatpush3.bf16.msra.mxu1 %v10848_v38  ;;  %10805 = vmatprep.subr.bf16.mxu0 %v10804_v19 }
 0x2e7   :  { %10853 = vmatprep.subr.bf16.mxu1 %v10852_v22  ;;  %9813 = vmatprep.mubr.f32.mxu0 %v12262_v6 }
 0x2e8   :  { %9897 = vmatprep.mubr.f32.mxu1 %v12262_v6  ;;  %9814 = vmatmul.mubr.f32.gmra.mrb[10].mxu0 %v12265_v50 }
 0x2e9   :  { %9898 = vmatmul.mubr.f32.gmra.mrb[10].mxu1 %v12265_v50  ;;  %10807 = vmatpush3.bf16.msra.mxu0 %v10804_v19 }
 0x2ea   :  { %10855 = vmatpush3.bf16.msra.mxu1 %v10852_v22  ;;  %10809 = vmatprep.subr.bf16.mxu0 %v12313_v51 }
 0x2eb   :  { %10857 = vmatprep.subr.bf16.mxu1 %v12322_v57  ;;  %9824 = vmatprep.mubr.f32.mxu0 %v12234_v31 }
 0x2ec   :  { %9908 = vmatprep.mubr.f32.mxu1 %v12234_v31  ;;  %9825 = vmatmul.mubr.f32.vlgmr.msra.gmra.mrb[8].mxu0 %v12260_v0  ;;  %v10816_v31 = vpack.c.bf16 %v2851_v43, %v2844_v49  ;;  %v2708_v43 = vpop.permute.xlu1 %2707 }
 0x2ed   :  { %9909 = vmatmul.mubr.f32.vlgmr.msra.gmra.mrb[8].mxu1 %v12260_v0  ;;  %10811 = vmatpush3.bf16.msra.mxu0 %v12313_v51  ;;  %v10864_v0 = vpack.c.bf16 %v3469_v29, %v3462_v21 }
 0x2ee   :  { %10859 = vmatpush3.bf16.msra.mxu1 %v12322_v57  ;;  %10813 = vmatprep.subr.bf16.mxu0 %v12351_v26 }
 0x2ef   :  { %10861 = vmatprep.subr.bf16.mxu1 %v12359_v45  ;;  %9827 = vmatprep.mubr.f32.mxu0 %v12274_v33 }
 0x2f0   :  { %9911 = vmatprep.mubr.f32.mxu1 %v12274_v33  ;;  %9828 = vmatmul.mubr.f32.gmra.mrb[10].mxu0 %v12277_v3  ;;  %v10820_v33 = vpack.c.bf16 %v2865_v46, %v2858_v63  ;;  %v2718_v46 = vpop.permute.xlu1 %2717 }
 0x2f1   :  { %9912 = vmatmul.mubr.f32.gmra.mrb[10].mxu1 %v12277_v3  ;;  %10815 = vmatpush3.bf16.msra.mxu0 %v12351_v26  ;;  %v10868_v3 = vpack.c.bf16 %v3483_v1, %v3476_v10 }
 0x2f2   :  { %10863 = vmatpush3.bf16.msra.mxu1 %v12359_v45  ;;  %10817 = vmatprep.subr.bf16.mxu0 %v10816_v31 }
 0x2f3   :  { %10865 = vmatprep.subr.bf16.mxu1 %v10864_v0  ;;  %9838 = vmatprep.mubr.f32.mxu0 %v12237_v2 }
 0x2f4   :  { %9922 = vmatprep.mubr.f32.mxu1 %v12237_v2  ;;  %9839 = vmatmul.mubr.f32.vlgmr.msra.gmra.mrb[8].mxu0 %v12271_v32  ;;  %v3968_v2 = vld [vmem:[%s13150_s1 + $0x80] sm:$0xff] }
 0x2f5   :  { %9923 = vmatmul.mubr.f32.vlgmr.msra.gmra.mrb[8].mxu1 %v12271_v32  ;;  %10819 = vmatpush3.bf16.msra.mxu0 %v10816_v31  ;;  %v3997_v32 = vsel %vm159_vm0, %v3968_v2, 0 }
 0x2f6   :  { %10867 = vmatpush3.bf16.msra.mxu1 %v10864_v0  ;;  %10821 = vmatprep.subr.bf16.mxu0 %v10820_v33 }
 0x2f7   :  { %10869 = vmatprep.subr.bf16.mxu1 %v10868_v3  ;;  %9841 = vmatprep.mubr.f32.mxu0 %v12284_v35 }
 0x2f8   :  { %9925 = vmatprep.mubr.f32.mxu1 %v12284_v35  ;;  %9842 = vmatmul.mubr.f32.gmra.mrb[10].mxu0 %v12287_v36  ;;  %v12471_v35 = vand.u32 4294901760, %v3997_v32 }
 0x2f9   :  { %9926 = vmatmul.mubr.f32.gmra.mrb[10].mxu1 %v12287_v36  ;;  %10823 = vmatpush3.bf16.msra.mxu0 %v10820_v33 }
 0x2fa   :  { %10871 = vmatpush3.bf16.msra.mxu1 %v10868_v3  ;;  %10825 = vmatprep.subr.bf16.mxu0 %v12313_v51 }
 0x2fb   :  { %10873 = vmatprep.subr.bf16.mxu1 %v12322_v57  ;;  %9852 = vmatprep.mubr.f32.mxu0 %v12231_v24 }
 0x2fc   :  { %9936 = vmatprep.mubr.f32.mxu1 %v12231_v24  ;;  %9853 = vmatmul.mubr.f32.vlgmr.msra.gmra.mrb[8].mxu0 %v12248_v41 }
 0x2fd   :  { %9937 = vmatmul.mubr.f32.vlgmr.msra.gmra.mrb[8].mxu1 %v12248_v41  ;;  %10827 = vmatpush3.bf16.msra.mxu0 %v12313_v51  ;;  %v2703_v51 = vpop.permute.xlu0 %2702 }
 0x2fe   :  { %10875 = vmatpush3.bf16.msra.mxu1 %v12322_v57  ;;  %10829 = vmatprep.subr.bf16.mxu0 %v12351_v26  ;;  %v4003_v57 = vsel %vm159_vm0, %v3970_v14, 0 }
 0x2ff   :  { %10877 = vmatprep.subr.bf16.mxu1 %v12359_v45  ;;  %9855 = vmatprep.mubr.f32.mxu0 %v12262_v6 }
 0x300   :  { %9939 = vmatprep.mubr.f32.mxu1 %v12262_v6  ;;  %9856 = vmatmul.mubr.f32.gmra.mrb[10].mxu0 %v12265_v50 }
 0x301   :  { %9940 = vmatmul.mubr.f32.gmra.mrb[10].mxu1 %v12265_v50  ;;  %10831 = vmatpush3.bf16.msra.mxu0 %v12351_v26  ;;  %v12495_v26 = vand.u32 4294901760, %v4003_v57  ;;  %v2713_v48 = vpop.permute.xlu0 %2712 }
 0x302   :  { %10879 = vmatpush3.bf16.msra.mxu1 %v12359_v45  ;;  %9866 = vmatprep.mubr.f32.mxu0 %v12231_v24 }
 0x303   :  { %9950 = vmatprep.mubr.f32.mxu1 %v12231_v24  ;;  %v12474_v24 = vsub.f32 %v3997_v32, %v12471_v35  ;;  %v12503_v62 = vsub.f32 %v4003_v57, %v12495_v26 }
 0x304   :  { %9867 = vmatmul.mubr.f32.vlgmr.msra.gmra.mrb[8].mxu0 %v12248_v41 }
 0x305   :  { %9951 = vmatmul.mubr.f32.vlgmr.msra.gmra.mrb[8].mxu1 %v12248_v41  ;;  %9869 = vmatprep.mubr.f32.mxu0 %v12262_v6  ;;  %v12477_v41 = vand.u32 4294901760, %v12474_v24  ;;  %v12512_v52 = vand.u32 4294901760, %v12503_v62 }
 0x306   :  { %9953 = vmatprep.mubr.f32.mxu1 %v12262_v6 }
 0x307   :  { %v4080_v6 = vsub.f32 %v12474_v24, %v12477_v41  ;;  %v4100_v58 = vsub.f32 %v12503_v62, %v12512_v52 }
 0x308   :  { %9870 = vmatmul.mubr.f32.gmra.mrb[10].mxu0 %v12265_v50 }
 0x309   :  { %9954 = vmatmul.mubr.f32.gmra.mrb[10].mxu1 %v12265_v50  ;;  %v4081_v36 = vand.u32 4294901760, %v4080_v6  ;;  %v3969_v50 = vld [vmem:[%s13150_s1 + $0x88] sm:$0xff]  ;;  %v12529_v32 = vand.u32 4294901760, %v4100_v58  ;;  %v12531_v6 = vand.u32 4294901760, %v4110_v34 }
 0x30a   :  { %v4000_v18 = vsel %vm159_vm0, %v3969_v50, 0 }
 0x30b   :  { %9964 = vmatprep.mubr.f32.mxu0 %v4081_v36  ;;  %10048 = vmatprep.mubr.f32.mxu1 %v4081_v36  ;;  %v12493_v49 = vand.u32 4294901760, %v4000_v18 }
 0x30d   :  { %v12500_v63 = vsub.f32 %v4000_v18, %v12493_v49 }
 0x30f   :  { %v12509_v53 = vand.u32 4294901760, %v12500_v63 }
 0x311   :  { %v4090_v54 = vsub.f32 %v12500_v63, %v12509_v53 }
 0x313   :  { %v12523_v31 = vand.u32 4294901760, %v4090_v54 }
 0x3d7   :  { %v9868_v29 = vpop.f32.mrb[8].mxu0 }
 0x3d8   :  { %v11256_v11 = vadd.f32 %v9868_v29, %v2708_v43  ;;  %v9952_v21 = vpop.f32.mrb[8].mxu1  ;;  %v3324_v23 = vpop.f32.mrb[9].mxu0 }
 0x3d9   :  { %v11260_v37 = vadd.f32 %v9952_v21, %v2708_v43  ;;  %v11257_v42 = vadd.f32 %v3324_v23, %v2703_v51  ;;  %v3942_v45 = vpop.f32.mrb[9].mxu1 }
 0x3da   :  { %11596 = vtanh.f32 %v11256_v11  ;;  %v11261_v59 = vadd.f32 %v3942_v45, %v2703_v51 }
 0x3db   :  { %11598 = vtanh.f32 %v11260_v37  ;;  %v9871_v60 = vpop.f32.mrb[10].mxu0 }
 0x3dc   :  { %11600 = vtanh.f32 %v11257_v42  ;;  %v11258_v61 = vadd.f32 %v9871_v60, %v2718_v46  ;;  %v9955_v1 = vpop.f32.mrb[10].mxu1  ;;  %v3336_v5 = vpop.f32.mrb[11].mxu0 }
 0x3dd   :  { %11602 = vtanh.f32 %v11261_v59  ;;  %v11262_v8 = vadd.f32 %v9955_v1, %v2718_v46  ;;  %v11259_v10 = vadd.f32 %v3336_v5, %v2713_v48  ;;  %v3954_v30 = vpop.f32.mrb[11].mxu1 }
 0x3de   :  { %11604 = vtanh.f32 %v11258_v61  ;;  %v11263_v4 = vadd.f32 %v3954_v30, %v2713_v48 }
 0x3df   :  { %11606 = vtanh.f32 %v11262_v8 }
 0x3e0   :  { %11608 = vtanh.f32 %v11259_v10 }
 0x3e1   :  { %11610 = vtanh.f32 %v11263_v4 }
 0x3e4   :  { %v11597_v25 = vpop.eup %11596 }
 0x3e5   :  { %v11599_v55 = vpop.eup %11598  ;;  %v4012_v16 = vand.u32 4294901760, %v11597_v25 }
 0x3e6   :  { %v11601_v12 = vpop.eup %11600  ;;  %v4626_v38 = vand.u32 4294901760, %v11599_v55 }
 0x3e7   :  { %v11603_v19 = vpop.eup %11602  ;;  %v4009_v22 = vand.u32 4294901760, %v11601_v12  ;;  %v12525_v0 = vsub.f32 %v11597_v25, %v4012_v16 }
 0x3e8   :  { %v11605_v33 = vpop.eup %11604  ;;  %v4623_v3 = vand.u32 4294901760, %v11603_v19  ;;  %v12527_v2 = vsub.f32 %v11599_v55, %v4626_v38 }
 0x3e9   :  { %v11607_v36 = vpop.eup %11606  ;;  %v12533_v50 = vpack.c.bf16 %v4012_v16, %v4009_v22  ;;  %v4018_v14 = vand.u32 4294901760, %v11605_v33  ;;  %v4119_v20 = vsub.f32 %v11601_v12, %v4009_v22  ;;  %v4127_v51 = vand.u32 4294901760, %v12525_v0 }
 0x3ea   :  { %v11609_v18 = vpop.eup %11608  ;;  %v12536_v43 = vpack.c.bf16 %v4626_v38, %v4623_v3  ;;  %v4632_v57 = vand.u32 4294901760, %v11607_v36  ;;  %v4733_v13 = vsub.f32 %v11603_v19, %v4623_v3  ;;  %v4741_v29 = vand.u32 4294901760, %v12527_v2 }
 0x3eb   :  { %v11611_v11 = vpop.eup %11610  ;;  %v4015_v21 = vand.u32 4294901760, %v11609_v18  ;;  %10881 = vmatprep.subr.bf16.mxu0 %v12533_v50  ;;  %v4120_v23 = vand.u32 4294901760, %v4119_v20  ;;  %v4128_v37 = vsub.f32 %v12525_v0, %v4127_v51  ;;  %v4140_v42 = vsub.f32 %v11605_v33, %v4018_v14 }
 0x3ec   :  { %v4629_v45 = vand.u32 4294901760, %v11611_v11  ;;  %10929 = vmatprep.subr.bf16.mxu1 %v12536_v43  ;;  %10883 = vmatpush3.bf16.msra.mxu0 %v12533_v50  ;;  %v4734_v48 = vand.u32 4294901760, %v4733_v13  ;;  %v4742_v59 = vsub.f32 %v12527_v2, %v4741_v29  ;;  %v4754_v46 = vsub.f32 %v11607_v36, %v4632_v57 }
 0x3ed   :  { %v12544_v60 = vpack.c.bf16 %v4018_v14, %v4015_v21  ;;  %10931 = vmatpush3.bf16.msra.mxu1 %v12536_v43  ;;  %v4121_v61 = vsub.f32 %v4119_v20, %v4120_v23  ;;  %v4129_v1 = vand.u32 4294901760, %v4128_v37  ;;  %v4133_v5 = vsub.f32 %v11609_v18, %v4015_v21 }
 0x3ee   :  { %v12547_v8 = vpack.c.bf16 %v4632_v57, %v4629_v45  ;;  %v4735_v10 = vsub.f32 %v4733_v13, %v4734_v48  ;;  %v4743_v30 = vand.u32 4294901760, %v4742_v59  ;;  %v4141_v4 = vand.u32 4294901760, %v4140_v42 }
 0x3ef   :  { %10885 = vmatprep.subr.bf16.mxu0 %v12544_v60  ;;  %v4122_v54 = vand.u32 4294901760, %v4121_v61  ;;  %v4134_v25 = vand.u32 4294901760, %v4133_v5  ;;  %v4747_v58 = vsub.f32 %v11611_v11, %v4629_v45  ;;  %v4755_v34 = vand.u32 4294901760, %v4754_v46 }
 0x3f0   :  { %10933 = vmatprep.subr.bf16.mxu1 %v12547_v8  ;;  %10887 = vmatpush3.bf16.msra.mxu0 %v12544_v60  ;;  %v4736_v55 = vand.u32 4294901760, %v4735_v10  ;;  %v4142_v16 = vsub.f32 %v4140_v42, %v4141_v4  ;;  %v10896_v12 = vpack.c.bf16 %v12525_v0, %v4119_v20  ;;  %v10944_v38 = vpack.c.bf16 %v12527_v2, %v4733_v13 }
 0x3f1   :  { %10935 = vmatpush3.bf16.msra.mxu1 %v12547_v8  ;;  %v10888_v19 = vpack.c.bf16 %v4129_v1, %v4122_v54  ;;  %v4135_v22 = vsub.f32 %v4133_v5, %v4134_v25  ;;  %v4748_v33 = vand.u32 4294901760, %v4747_v58  ;;  %v4756_v3 = vsub.f32 %v4754_v46, %v4755_v34 }
 0x3f2   :  { %v10936_v36 = vpack.c.bf16 %v4743_v30, %v4736_v55  ;;  %v4143_v14 = vand.u32 4294901760, %v4142_v16  ;;  %v10900_v18 = vpack.c.bf16 %v4140_v42, %v4133_v5  ;;  %v10948_v57 = vpack.c.bf16 %v4754_v46, %v4747_v58 }
 0x3f3   :  { %9965 = vmatmul.mubr.f32.vlgmr.msra.gmra.mrb[12].mxu0 %v12523_v31  ;;  %10889 = vmatprep.subr.bf16.mxu0 %v10888_v19  ;;  %v4136_v11 = vand.u32 4294901760, %v4135_v22  ;;  %v4749_v21 = vsub.f32 %v4747_v58, %v4748_v33  ;;  %v4757_v37 = vand.u32 4294901760, %v4756_v3  ;;  %v10912_v45 = vpack.c.bf16 %v4127_v51, %v4120_v23 }
 0x3f4   :  { %10049 = vmatmul.mubr.f32.vlgmr.msra.gmra.mrb[12].mxu1 %v12523_v31  ;;  %10937 = vmatprep.subr.bf16.mxu1 %v10936_v36  ;;  %v10960_v0 = vpack.c.bf16 %v4741_v29, %v4734_v48  ;;  %v10916_v2 = vpack.c.bf16 %v4141_v4, %v4134_v25  ;;  %v10964_v20 = vpack.c.bf16 %v4755_v34, %v4748_v33  ;;  %v5254_v31 = vld [vmem:[%s13150_s1 + $0xb0] sm:$0xff] }
 0x3f5   :  { %10891 = vmatpush3.bf16.msra.mxu0 %v10888_v19  ;;  %10939 = vmatpush3.bf16.msra.mxu1 %v10936_v36  ;;  %v10892_v13 = vpack.c.bf16 %v4143_v14, %v4136_v11  ;;  %v4750_v59 = vand.u32 4294901760, %v4749_v21  ;;  %v5287_v1 = vsel %vm159_vm0, %v5254_v31, 0 }
 0x3f6   :  { %9967 = vmatprep.mubr.f32.mxu0 %v12529_v32  ;;  %10051 = vmatprep.mubr.f32.mxu1 %v12529_v32 }
 0x3f7   :  { %9968 = vmatmul.mubr.f32.gmra.mrb[14].mxu0 %v12531_v6  ;;  %10893 = vmatprep.subr.bf16.mxu0 %v10892_v13  ;;  %v10940_v42 = vpack.c.bf16 %v4757_v37, %v4750_v59 }
 0x3f8   :  { %10052 = vmatmul.mubr.f32.gmra.mrb[14].mxu1 %v12531_v6  ;;  %9978 = vmatprep.mubr.f32.mxu0 %v12471_v35 }
 0x3f9   :  { %10941 = vmatprep.subr.bf16.mxu1 %v10940_v42  ;;  %10895 = vmatpush3.bf16.msra.mxu0 %v10892_v13 }
 0x3fa   :  { %10943 = vmatpush3.bf16.msra.mxu1 %v10940_v42  ;;  %10897 = vmatprep.subr.bf16.mxu0 %v10896_v12 }
 0x3fb   :  { %10945 = vmatprep.subr.bf16.mxu1 %v10944_v38  ;;  %10062 = vmatprep.mubr.f32.mxu1 %v12471_v35 }
 0x3fc   :  { %9979 = vmatmul.mubr.f32.vlgmr.msra.gmra.mrb[12].mxu0 %v12493_v49 }
 0x3fd   :  { %10063 = vmatmul.mubr.f32.vlgmr.msra.gmra.mrb[12].mxu1 %v12493_v49  ;;  %10899 = vmatpush3.bf16.msra.mxu0 %v10896_v12 }
 0x3fe   :  { %10947 = vmatpush3.bf16.msra.mxu1 %v10944_v38  ;;  %10901 = vmatprep.subr.bf16.mxu0 %v10900_v18  ;;  %v12652_v38 = vand.u32 4294901760, %v5287_v1 }
 0x3ff   :  { %10949 = vmatprep.subr.bf16.mxu1 %v10948_v57  ;;  %9981 = vmatprep.mubr.f32.mxu0 %v12495_v26 }
 0x400   :  { %10065 = vmatprep.mubr.f32.mxu1 %v12495_v26  ;;  %9982 = vmatmul.mubr.f32.gmra.mrb[14].mxu0 %v12497_v28  ;;  %v12664_v36 = vsub.f32 %v5287_v1, %v12652_v38 }
 0x401   :  { %10066 = vmatmul.mubr.f32.gmra.mrb[14].mxu1 %v12497_v28  ;;  %10903 = vmatpush3.bf16.msra.mxu0 %v10900_v18 }
 0x402   :  { %10951 = vmatpush3.bf16.msra.mxu1 %v10948_v57  ;;  %10905 = vmatprep.subr.bf16.mxu0 %v12533_v50 }
 0x403   :  { %10953 = vmatprep.subr.bf16.mxu1 %v12536_v43  ;;  %9992 = vmatprep.mubr.f32.mxu0 %v12474_v24 }
 0x404   :  { %10076 = vmatprep.mubr.f32.mxu1 %v12474_v24  ;;  %9993 = vmatmul.mubr.f32.vlgmr.msra.gmra.mrb[12].mxu0 %v12500_v63  ;;  %v5252_v24 = vld [vmem:[%s13150_s1 + $0xa0] sm:$0xff] }
 0x405   :  { %10077 = vmatmul.mubr.f32.vlgmr.msra.gmra.mrb[12].mxu1 %v12500_v63  ;;  %10907 = vmatpush3.bf16.msra.mxu0 %v12533_v50 }
 0x406   :  { %10955 = vmatpush3.bf16.msra.mxu1 %v12536_v43  ;;  %10909 = vmatprep.subr.bf16.mxu0 %v12544_v60 }
 0x407   :  { %10957 = vmatprep.subr.bf16.mxu1 %v12547_v8  ;;  %9995 = vmatprep.mubr.f32.mxu0 %v12503_v62 }
 0x408   :  { %10079 = vmatprep.mubr.f32.mxu1 %v12503_v62  ;;  %9996 = vmatmul.mubr.f32.gmra.mrb[14].mxu0 %v12506_v7 }
 0x409   :  { %10080 = vmatmul.mubr.f32.gmra.mrb[14].mxu1 %v12506_v7  ;;  %10911 = vmatpush3.bf16.msra.mxu0 %v12544_v60  ;;  %v3979_v7 = vpop.permute.xlu0 %3978 }
 0x40a   :  { %10959 = vmatpush3.bf16.msra.mxu1 %v12547_v8  ;;  %10913 = vmatprep.subr.bf16.mxu0 %v10912_v45 }
 0x40b   :  { %10961 = vmatprep.subr.bf16.mxu1 %v10960_v0  ;;  %10006 = vmatprep.mubr.f32.mxu0 %v12477_v41 }
 0x40c   :  { %10090 = vmatprep.mubr.f32.mxu1 %v12477_v41  ;;  %10007 = vmatmul.mubr.f32.vlgmr.msra.gmra.mrb[12].mxu0 %v12509_v53  ;;  %v5281_v41 = vsel %vm159_vm0, %v5252_v24, 0 }
 0x40d   :  { %10091 = vmatmul.mubr.f32.vlgmr.msra.gmra.mrb[12].mxu1 %v12509_v53  ;;  %10915 = vmatpush3.bf16.msra.mxu0 %v10912_v45  ;;  %v12621_v63 = vand.u32 4294901760, %v5281_v41  ;;  %v3984_v53 = vpop.permute.xlu1 %3983  ;;  %v3989_v46 = vpop.permute.xlu0 %3988 }
 0x40e   :  { %10963 = vmatpush3.bf16.msra.mxu1 %v10960_v0  ;;  %10917 = vmatprep.subr.bf16.mxu0 %v10916_v2 }
 0x40f   :  { %10965 = vmatprep.subr.bf16.mxu1 %v10964_v20  ;;  %10009 = vmatprep.mubr.f32.mxu0 %v12512_v52 }
 0x410   :  { %10093 = vmatprep.mubr.f32.mxu1 %v12512_v52  ;;  %10010 = vmatmul.mubr.f32.gmra.mrb[14].mxu0 %v12515_v17 }
 0x411   :  { %10094 = vmatmul.mubr.f32.gmra.mrb[14].mxu1 %v12515_v17  ;;  %10919 = vmatpush3.bf16.msra.mxu0 %v10916_v2  ;;  %v3994_v5 = vpop.permute.xlu1 %3993 }
 0x412   :  { %10967 = vmatpush3.bf16.msra.mxu1 %v10964_v20  ;;  %10921 = vmatprep.subr.bf16.mxu0 %v12533_v50 }
 0x413   :  { %10969 = vmatprep.subr.bf16.mxu1 %v12536_v43  ;;  %10020 = vmatprep.mubr.f32.mxu0 %v12471_v35 }
 0x414   :  { %10104 = vmatprep.mubr.f32.mxu1 %v12471_v35  ;;  %10021 = vmatmul.mubr.f32.vlgmr.msra.gmra.mrb[12].mxu0 %v12493_v49 }
 0x415   :  { %10105 = vmatmul.mubr.f32.vlgmr.msra.gmra.mrb[12].mxu1 %v12493_v49  ;;  %10923 = vmatpush3.bf16.msra.mxu0 %v12533_v50 }
 0x416   :  { %10971 = vmatpush3.bf16.msra.mxu1 %v12536_v43  ;;  %10925 = vmatprep.subr.bf16.mxu0 %v12544_v60  ;;  %v5255_v43 = vld [vmem:[%s13150_s1 + $0xb8] sm:$0xff] }
 0x417   :  { %10973 = vmatprep.subr.bf16.mxu1 %v12547_v8  ;;  %10023 = vmatprep.mubr.f32.mxu0 %v12495_v26  ;;  %v5290_v4 = vsel %vm159_vm0, %v5255_v43, 0 }
 0x418   :  { %10107 = vmatprep.mubr.f32.mxu1 %v12495_v26  ;;  %10024 = vmatmul.mubr.f32.gmra.mrb[14].mxu0 %v12497_v28  ;;  %v12655_v19 = vand.u32 4294901760, %v5290_v4 }
 0x419   :  { %10108 = vmatmul.mubr.f32.gmra.mrb[14].mxu1 %v12497_v28  ;;  %10927 = vmatpush3.bf16.msra.mxu0 %v12544_v60 }
 0x41a   :  { %10975 = vmatpush3.bf16.msra.mxu1 %v12547_v8  ;;  %10034 = vmatprep.mubr.f32.mxu0 %v12471_v35 }
 0x41b   :  { %10118 = vmatprep.mubr.f32.mxu1 %v12471_v35  ;;  %v12624_v35 = vsub.f32 %v5281_v41, %v12621_v63 }
 0x41c   :  { %10035 = vmatmul.mubr.f32.vlgmr.msra.gmra.mrb[12].mxu0 %v12493_v49 }
 0x41d   :  { %10119 = vmatmul.mubr.f32.vlgmr.msra.gmra.mrb[12].mxu1 %v12493_v49  ;;  %10037 = vmatprep.mubr.f32.mxu0 %v12495_v26  ;;  %v12627_v49 = vand.u32 4294901760, %v12624_v35 }
 0x41e   :  { %10121 = vmatprep.mubr.f32.mxu1 %v12495_v26 }
 0x41f   :  { %v5364_v26 = vsub.f32 %v12624_v35, %v12627_v49 }
 0x420   :  { %10038 = vmatmul.mubr.f32.gmra.mrb[14].mxu0 %v12497_v28 }
 0x421   :  { %10122 = vmatmul.mubr.f32.gmra.mrb[14].mxu1 %v12497_v28  ;;  %v5365_v62 = vand.u32 4294901760, %v5364_v26  ;;  %v5253_v28 = vld [vmem:[%s13150_s1 + $0xa8] sm:$0xff] }
 0x422   :  { %v5284_v52 = vsel %vm159_vm0, %v5253_v28, 0 }
 0x423   :  { %10132 = vmatprep.mubr.f32.mxu0 %v5365_v62  ;;  %10216 = vmatprep.mubr.f32.mxu1 %v5365_v62  ;;  %v12638_v51 = vand.u32 4294901760, %v5284_v52 }
 0x425   :  { %v12650_v55 = vsub.f32 %v5284_v52, %v12638_v51 }
 0x427   :  { %v12661_v3 = vand.u32 4294901760, %v12650_v55 }
 0x4ef   :  { %v10036_v17 = vpop.f32.mrb[12].mxu0 }
 0x4f0   :  { %v11264_v32 = vadd.f32 %v10036_v17, %v3984_v53  ;;  %v10120_v6 = vpop.f32.mrb[12].mxu1  ;;  %v4600_v50 = vpop.f32.mrb[13].mxu0 }
 0x4f1   :  { %v11268_v29 = vadd.f32 %v10120_v6, %v3984_v53  ;;  %v11265_v23 = vadd.f32 %v4600_v50, %v3979_v7  ;;  %v5214_v48 = vpop.f32.mrb[13].mxu1 }
 0x4f2   :  { %v5237_v60 = vadd.f32 %v12281_v39, %v11264_v32  ;;  %v11269_v61 = vadd.f32 %v5214_v48, %v3979_v7 }
 0x4f3   :  { %v5245_v8 = vadd.f32 %v12289_v44, %v11268_v29  ;;  %v5236_v10 = vadd.f32 %v12292_v47, %v11265_v23  ;;  %v10039_v30 = vpop.f32.mrb[14].mxu0 }
 0x4f4   :  { %11612 = vtanh.f32 %v5237_v60  ;;  %v5244_v54 = vadd.f32 %v12295_v15, %v11269_v61  ;;  %v11266_v25 = vadd.f32 %v10039_v30, %v3994_v5  ;;  %v10123_v58 = vpop.f32.mrb[14].mxu1  ;;  %v4612_v34 = vpop.f32.mrb[15].mxu0 }
 0x4f5   :  { %11614 = vtanh.f32 %v5245_v8  ;;  %v11270_v39 = vadd.f32 %v10123_v58, %v3994_v5  ;;  %v11267_v16 = vadd.f32 %v4612_v34, %v3989_v46  ;;  %v5226_v12 = vpop.f32.mrb[15].mxu1 }
 0x4f6   :  { %11616 = vtanh.f32 %v5236_v10  ;;  %v5239_v44 = vadd.f32 %v12301_v40, %v11266_v25  ;;  %v11271_v47 = vadd.f32 %v5226_v12, %v3989_v46  ;;  %v12667_v40 = vsub.f32 %v5290_v4, %v12655_v19 }
 0x4f7   :  { %11618 = vtanh.f32 %v5244_v54  ;;  %v5247_v15 = vadd.f32 %v12311_v9, %v11270_v39  ;;  %v5238_v22 = vadd.f32 %v12320_v56, %v11267_v16  ;;  %v5374_v9 = vsub.f32 %v12650_v55, %v12661_v3 }
 0x4f8   :  { %11620 = vtanh.f32 %v5239_v44  ;;  %v5246_v33 = vadd.f32 %v12329_v27, %v11271_v47  ;;  %v12674_v56 = vand.u32 4294901760, %v12664_v36  ;;  %v12677_v27 = vand.u32 4294901760, %v12667_v40 }
 0x4f9   :  { %11622 = vtanh.f32 %v5247_v15  ;;  %v5375_v0 = vand.u32 4294901760, %v5374_v9 }
 0x4fa   :  { %11624 = vtanh.f32 %v5238_v22  ;;  %v5384_v42 = vsub.f32 %v12664_v36, %v12674_v56  ;;  %v5394_v24 = vsub.f32 %v12667_v40, %v12677_v27 }
 0x4fb   :  { %11626 = vtanh.f32 %v5246_v33 }
 0x4fe   :  { %v12671_v14 = vpop.eup %11612 }
 0x4ff   :  { %v12679_v18 = vpop.eup %11614  ;;  %v5296_v57 = vand.u32 4294901760, %v12671_v14 }
 0x500   :  { %v12682_v11 = vpop.eup %11616  ;;  %v5914_v21 = vand.u32 4294901760, %v12679_v18 }
 0x501   :  { %v12685_v37 = vpop.eup %11618  ;;  %v5293_v45 = vand.u32 4294901760, %v12682_v11  ;;  %v12689_v2 = vsub.f32 %v12671_v14, %v5296_v57 }
 0x502   :  { %v12691_v20 = vpop.eup %11620  ;;  %v5911_v13 = vand.u32 4294901760, %v12685_v37  ;;  %v12695_v59 = vsub.f32 %v12679_v18, %v5914_v21 }
 0x503   :  { %v12701_v41 = vpop.eup %11622  ;;  %v12703_v26 = vpack.c.bf16 %v5296_v57, %v5293_v45  ;;  %v5302_v62 = vand.u32 4294901760, %v12691_v20  ;;  %v12707_v28 = vsub.f32 %v12682_v11, %v5293_v45  ;;  %v5411_v7 = vand.u32 4294901760, %v12689_v2 }
 0x504   :  { %v12710_v53 = vpop.eup %11624  ;;  %v12712_v52 = vpack.c.bf16 %v5914_v21, %v5911_v13  ;;  %v5920_v17 = vand.u32 4294901760, %v12701_v41  ;;  %v12716_v31 = vsub.f32 %v12685_v37, %v5911_v13  ;;  %v6029_v32 = vand.u32 4294901760, %v12695_v59 }
 0x505   :  { %v12719_v6 = vpop.eup %11626  ;;  %10977 = vmatprep.subr.bf16.mxu0 %v12703_v26  ;;  %v5299_v50 = vand.u32 4294901760, %v12710_v53  ;;  %v5404_v43 = vand.u32 4294901760, %v12707_v28  ;;  %v5412_v29 = vsub.f32 %v12689_v2, %v5411_v7  ;;  %v12728_v23 = vsub.f32 %v12691_v20, %v5302_v62 }
 0x506   :  { %11025 = vmatprep.subr.bf16.mxu1 %v12712_v52  ;;  %10979 = vmatpush3.bf16.msra.mxu0 %v12703_v26  ;;  %v5917_v48 = vand.u32 4294901760, %v12719_v6  ;;  %v6022_v46 = vand.u32 4294901760, %v12716_v31  ;;  %v6030_v60 = vsub.f32 %v12695_v59, %v6029_v32  ;;  %v12738_v61 = vsub.f32 %v12701_v41, %v5920_v17 }
 0x507   :  { %11027 = vmatpush3.bf16.msra.mxu1 %v12712_v52  ;;  %v12741_v1 = vpack.c.bf16 %v5302_v62, %v5299_v50  ;;  %v5405_v5 = vsub.f32 %v12707_v28, %v5404_v43  ;;  %v5413_v8 = vand.u32 4294901760, %v5412_v29  ;;  %v12747_v10 = vsub.f32 %v12710_v53, %v5299_v50 }
 0x508   :  { %v12749_v30 = vpack.c.bf16 %v5920_v17, %v5917_v48  ;;  %v6023_v4 = vsub.f32 %v12716_v31, %v6022_v46  ;;  %v6031_v54 = vand.u32 4294901760, %v6030_v60  ;;  %v5425_v25 = vand.u32 4294901760, %v12728_v23 }
 0x509   :  { %10981 = vmatprep.subr.bf16.mxu0 %v12741_v1  ;;  %v5406_v58 = vand.u32 4294901760, %v5405_v5  ;;  %v5418_v34 = vand.u32 4294901760, %v12747_v10  ;;  %v12758_v39 = vsub.f32 %v12719_v6, %v5917_v48  ;;  %v6043_v16 = vand.u32 4294901760, %v12738_v61 }
 0x50a   :  { %11029 = vmatprep.subr.bf16.mxu1 %v12749_v30  ;;  %10983 = vmatpush3.bf16.msra.mxu0 %v12741_v1  ;;  %v6024_v12 = vand.u32 4294901760, %v6023_v4  ;;  %v5426_v44 = vsub.f32 %v12728_v23, %v5425_v25  ;;  %v5385_v57 = vand.u32 4294901760, %v5384_v42  ;;  %v5395_v45 = vand.u32 4294901760, %v5394_v24 }
 0x50b   :  { %11031 = vmatpush3.bf16.msra.mxu1 %v12749_v30  ;;  %v10984_v47 = vpack.c.bf16 %v5413_v8, %v5406_v58  ;;  %v5419_v15 = vsub.f32 %v12747_v10, %v5418_v34  ;;  %v6036_v22 = vand.u32 4294901760, %v12758_v39  ;;  %v6044_v33 = vsub.f32 %v12738_v61, %v6043_v16 }
 0x50c   :  { %v11032_v9 = vpack.c.bf16 %v6031_v54, %v6024_v12  ;;  %v5427_v21 = vand.u32 4294901760, %v5426_v44  ;;  %v10992_v24 = vpack.c.bf16 %v12689_v2, %v12707_v28  ;;  %v10996_v48 = vpack.c.bf16 %v12728_v23, %v12747_v10  ;;  %v6530_v2 = vld [vmem:[%s13150_s1 + $0xd0] sm:$0xff] }
 0x50d   :  { %10133 = vmatmul.mubr.f32.vlgmr.msra.gmra.mrb[16].mxu0 %v5375_v0  ;;  %10985 = vmatprep.subr.bf16.mxu0 %v10984_v47  ;;  %v5420_v13 = vand.u32 4294901760, %v5419_v15  ;;  %v6037_v62 = vsub.f32 %v12758_v39, %v6036_v22  ;;  %v6045_v17 = vand.u32 4294901760, %v6044_v33  ;;  %v11044_v60 = vpack.c.bf16 %v12738_v61, %v12758_v39 }
 0x50e   :  { %10217 = vmatmul.mubr.f32.vlgmr.msra.gmra.mrb[16].mxu1 %v5375_v0  ;;  %11033 = vmatprep.subr.bf16.mxu1 %v11032_v9  ;;  %v11040_v0 = vpack.c.bf16 %v12695_v59, %v12716_v31  ;;  %v6531_v59 = vld [vmem:[%s13150_s1 + $0xd8] sm:$0xff] }
 0x50f   :  { %10987 = vmatpush3.bf16.msra.mxu0 %v10984_v47  ;;  %11035 = vmatpush3.bf16.msra.mxu1 %v11032_v9  ;;  %v10988_v50 = vpack.c.bf16 %v5427_v21, %v5420_v13  ;;  %v6038_v29 = vand.u32 4294901760, %v6037_v62  ;;  %v6566_v31 = vsel %vm159_vm0, %v6531_v59, 0 }
 0x510   :  { %10135 = vmatprep.mubr.f32.mxu0 %v5385_v57  ;;  %10219 = vmatprep.mubr.f32.mxu1 %v5385_v57  ;;  %v12887_v5 = vand.u32 4294901760, %v6566_v31 }
 0x511   :  { %10136 = vmatmul.mubr.f32.gmra.mrb[18].mxu0 %v5395_v45  ;;  %10989 = vmatprep.subr.bf16.mxu0 %v10988_v50  ;;  %v11036_v42 = vpack.c.bf16 %v6045_v17, %v6038_v29 }
 0x512   :  { %10220 = vmatmul.mubr.f32.gmra.mrb[18].mxu1 %v5395_v45  ;;  %10146 = vmatprep.mubr.f32.mxu0 %v12621_v63  ;;  %v12896_v47 = vsub.f32 %v6566_v31, %v12887_v5 }
 0x513   :  { %11037 = vmatprep.subr.bf16.mxu1 %v11036_v42  ;;  %10991 = vmatpush3.bf16.msra.mxu0 %v10988_v50 }
 0x514   :  { %11039 = vmatpush3.bf16.msra.mxu1 %v11036_v42  ;;  %10993 = vmatprep.subr.bf16.mxu0 %v10992_v24  ;;  %v12905_v45 = vand.u32 4294901760, %v12896_v47 }
 0x515   :  { %11041 = vmatprep.subr.bf16.mxu1 %v11040_v0  ;;  %10230 = vmatprep.mubr.f32.mxu1 %v12621_v63 }
 0x516   :  { %10147 = vmatmul.mubr.f32.vlgmr.msra.gmra.mrb[16].mxu0 %v12638_v51  ;;  %v6670_v50 = vsub.f32 %v12896_v47, %v12905_v45 }
 0x517   :  { %10231 = vmatmul.mubr.f32.vlgmr.msra.gmra.mrb[16].mxu1 %v12638_v51  ;;  %10995 = vmatpush3.bf16.msra.mxu0 %v10992_v24 }
 0x518   :  { %11043 = vmatpush3.bf16.msra.mxu1 %v11040_v0  ;;  %10997 = vmatprep.subr.bf16.mxu0 %v10996_v48 }
 0x519   :  { %11045 = vmatprep.subr.bf16.mxu1 %v11044_v60  ;;  %10149 = vmatprep.mubr.f32.mxu0 %v12652_v38 }
 0x51a   :  { %10233 = vmatprep.mubr.f32.mxu1 %v12652_v38  ;;  %10150 = vmatmul.mubr.f32.gmra.mrb[18].mxu0 %v12655_v19 }
 0x51b   :  { %10234 = vmatmul.mubr.f32.gmra.mrb[18].mxu1 %v12655_v19  ;;  %10999 = vmatpush3.bf16.msra.mxu0 %v10996_v48 }
 0x51c   :  { %11047 = vmatpush3.bf16.msra.mxu1 %v11044_v60  ;;  %11001 = vmatprep.subr.bf16.mxu0 %v12703_v26 }
 0x51d   :  { %11049 = vmatprep.subr.bf16.mxu1 %v12712_v52  ;;  %10160 = vmatprep.mubr.f32.mxu0 %v12624_v35 }
 0x51e   :  { %10244 = vmatprep.mubr.f32.mxu1 %v12624_v35  ;;  %10161 = vmatmul.mubr.f32.vlgmr.msra.gmra.mrb[16].mxu0 %v12650_v55  ;;  %v11008_v35 = vpack.c.bf16 %v5411_v7, %v5404_v43  ;;  %v5268_v7 = vpop.permute.xlu1 %5267 }
 0x51f   :  { %10245 = vmatmul.mubr.f32.vlgmr.msra.gmra.mrb[16].mxu1 %v12650_v55  ;;  %11003 = vmatpush3.bf16.msra.mxu0 %v12703_v26  ;;  %v11056_v55 = vpack.c.bf16 %v6029_v32, %v6022_v46 }
 0x520   :  { %11051 = vmatpush3.bf16.msra.mxu1 %v12712_v52  ;;  %11005 = vmatprep.subr.bf16.mxu0 %v12741_v1 }
 0x521   :  { %11053 = vmatprep.subr.bf16.mxu1 %v12749_v30  ;;  %10163 = vmatprep.mubr.f32.mxu0 %v12664_v36 }
 0x522   :  { %10247 = vmatprep.mubr.f32.mxu1 %v12664_v36  ;;  %10164 = vmatmul.mubr.f32.gmra.mrb[18].mxu0 %v12667_v40  ;;  %v11012_v36 = vpack.c.bf16 %v5425_v25, %v5418_v34  ;;  %v5278_v25 = vpop.permute.xlu1 %5277 }
 0x523   :  { %10248 = vmatmul.mubr.f32.gmra.mrb[18].mxu1 %v12667_v40  ;;  %11007 = vmatpush3.bf16.msra.mxu0 %v12741_v1  ;;  %v11060_v40 = vpack.c.bf16 %v6043_v16, %v6036_v22 }
 0x524   :  { %11055 = vmatpush3.bf16.msra.mxu1 %v12749_v30  ;;  %11009 = vmatprep.subr.bf16.mxu0 %v11008_v35 }
 0x525   :  { %11057 = vmatprep.subr.bf16.mxu1 %v11056_v55  ;;  %10174 = vmatprep.mubr.f32.mxu0 %v12627_v49 }
 0x526   :  { %10258 = vmatprep.mubr.f32.mxu1 %v12627_v49  ;;  %10175 = vmatmul.mubr.f32.vlgmr.msra.gmra.mrb[16].mxu0 %v12661_v3  ;;  %v6528_v49 = vld [vmem:[%s13150_s1 + $0xc0] sm:$0xff] }
 0x527   :  { %10259 = vmatmul.mubr.f32.vlgmr.msra.gmra.mrb[16].mxu1 %v12661_v3  ;;  %11011 = vmatpush3.bf16.msra.mxu0 %v11008_v35  ;;  %v6557_v3 = vsel %vm159_vm0, %v6528_v49, 0 }
 0x528   :  { %11059 = vmatpush3.bf16.msra.mxu1 %v11056_v55  ;;  %11013 = vmatprep.subr.bf16.mxu0 %v11012_v36 }
 0x529   :  { %11061 = vmatprep.subr.bf16.mxu1 %v11060_v40  ;;  %10177 = vmatprep.mubr.f32.mxu0 %v12674_v56 }
 0x52a   :  { %10261 = vmatprep.mubr.f32.mxu1 %v12674_v56  ;;  %10178 = vmatmul.mubr.f32.gmra.mrb[18].mxu0 %v12677_v27  ;;  %v12861_v56 = vand.u32 4294901760, %v6557_v3 }
 0x52b   :  { %10262 = vmatmul.mubr.f32.gmra.mrb[18].mxu1 %v12677_v27  ;;  %11015 = vmatpush3.bf16.msra.mxu0 %v11012_v36 }
 0x52c   :  { %11063 = vmatpush3.bf16.msra.mxu1 %v11060_v40  ;;  %11017 = vmatprep.subr.bf16.mxu0 %v12703_v26 }
 0x52d   :  { %11065 = vmatprep.subr.bf16.mxu1 %v12712_v52  ;;  %10188 = vmatprep.mubr.f32.mxu0 %v12621_v63 }
 0x52e   :  { %10272 = vmatprep.mubr.f32.mxu1 %v12621_v63  ;;  %10189 = vmatmul.mubr.f32.vlgmr.msra.gmra.mrb[16].mxu0 %v12638_v51 }
 0x52f   :  { %10273 = vmatmul.mubr.f32.vlgmr.msra.gmra.mrb[16].mxu1 %v12638_v51  ;;  %11019 = vmatpush3.bf16.msra.mxu0 %v12703_v26  ;;  %v5263_v26 = vpop.permute.xlu0 %5262 }
 0x530   :  { %11067 = vmatpush3.bf16.msra.mxu1 %v12712_v52  ;;  %11021 = vmatprep.subr.bf16.mxu0 %v12741_v1  ;;  %v6563_v52 = vsel %vm159_vm0, %v6530_v2, 0 }
 0x531   :  { %11069 = vmatprep.subr.bf16.mxu1 %v12749_v30  ;;  %10191 = vmatprep.mubr.f32.mxu0 %v12652_v38 }
 0x532   :  { %10275 = vmatprep.mubr.f32.mxu1 %v12652_v38  ;;  %10192 = vmatmul.mubr.f32.gmra.mrb[18].mxu0 %v12655_v19 }
 0x533   :  { %10276 = vmatmul.mubr.f32.gmra.mrb[18].mxu1 %v12655_v19  ;;  %11023 = vmatpush3.bf16.msra.mxu0 %v12741_v1  ;;  %v12885_v1 = vand.u32 4294901760, %v6563_v52  ;;  %v5273_v4 = vpop.permute.xlu0 %5272 }
 0x534   :  { %11071 = vmatpush3.bf16.msra.mxu1 %v12749_v30  ;;  %10202 = vmatprep.mubr.f32.mxu0 %v12621_v63 }
 0x535   :  { %10286 = vmatprep.mubr.f32.mxu1 %v12621_v63  ;;  %v12864_v63 = vsub.f32 %v6557_v3, %v12861_v56  ;;  %v12893_v44 = vsub.f32 %v6563_v52, %v12885_v1 }
 0x536   :  { %10203 = vmatmul.mubr.f32.vlgmr.msra.gmra.mrb[16].mxu0 %v12638_v51 }
 0x537   :  { %10287 = vmatmul.mubr.f32.vlgmr.msra.gmra.mrb[16].mxu1 %v12638_v51  ;;  %10205 = vmatprep.mubr.f32.mxu0 %v12652_v38  ;;  %v12867_v51 = vand.u32 4294901760, %v12864_v63  ;;  %v12902_v21 = vand.u32 4294901760, %v12893_v44 }
 0x538   :  { %10289 = vmatprep.mubr.f32.mxu1 %v12652_v38 }
 0x539   :  { %v6640_v38 = vsub.f32 %v12864_v63, %v12867_v51  ;;  %v6660_v17 = vsub.f32 %v12893_v44, %v12902_v21 }
 0x53a   :  { %10206 = vmatmul.mubr.f32.gmra.mrb[18].mxu0 %v12655_v19 }
 0x53b   :  { %10290 = vmatmul.mubr.f32.gmra.mrb[18].mxu1 %v12655_v19  ;;  %v6641_v27 = vand.u32 4294901760, %v6640_v38  ;;  %v6529_v19 = vld [vmem:[%s13150_s1 + $0xc8] sm:$0xff]  ;;  %v12919_v3 = vand.u32 4294901760, %v6660_v17  ;;  %v12921_v38 = vand.u32 4294901760, %v6670_v50 }
 0x53c   :  { %v6560_v28 = vsel %vm159_vm0, %v6529_v19, 0 }
 0x53d   :  { %10300 = vmatprep.mubr.f32.mxu0 %v6641_v27  ;;  %10384 = vmatprep.mubr.f32.mxu1 %v6641_v27  ;;  %v12883_v43 = vand.u32 4294901760, %v6560_v28 }
 0x53f   :  { %v12890_v34 = vsub.f32 %v6560_v28, %v12883_v43 }
 0x541   :  { %v12899_v57 = vand.u32 4294901760, %v12890_v34 }
 0x543   :  { %v6650_v13 = vsub.f32 %v12890_v34, %v12899_v57 }
 0x545   :  { %v12913_v35 = vand.u32 4294901760, %v6650_v13 }
 0x609   :  { %v10204_v32 = vpop.f32.mrb[16].mxu0 }
 0x60a   :  { %v11272_v23 = vadd.f32 %v10204_v32, %v5268_v7  ;;  %v10288_v46 = vpop.f32.mrb[16].mxu1  ;;  %v5884_v61 = vpop.f32.mrb[17].mxu0 }
 0x60b   :  { %v11276_v8 = vadd.f32 %v10288_v46, %v5268_v7  ;;  %v11273_v10 = vadd.f32 %v5884_v61, %v5263_v26  ;;  %v6502_v30 = vpop.f32.mrb[17].mxu1 }
 0x60c   :  { %11628 = vtanh.f32 %v11272_v23  ;;  %v11277_v54 = vadd.f32 %v6502_v30, %v5263_v26 }
 0x60d   :  { %11630 = vtanh.f32 %v11276_v8  ;;  %v10207_v58 = vpop.f32.mrb[18].mxu0 }
 0x60e   :  { %11632 = vtanh.f32 %v11273_v10  ;;  %v11274_v39 = vadd.f32 %v10207_v58, %v5278_v25  ;;  %v10291_v16 = vpop.f32.mrb[18].mxu1  ;;  %v5896_v12 = vpop.f32.mrb[19].mxu0 }
 0x60f   :  { %11634 = vtanh.f32 %v11277_v54  ;;  %v11278_v15 = vadd.f32 %v10291_v16, %v5278_v25  ;;  %v11275_v22 = vadd.f32 %v5896_v12, %v5273_v4  ;;  %v6514_v33 = vpop.f32.mrb[19].mxu1 }
 0x610   :  { %11636 = vtanh.f32 %v11274_v39  ;;  %v11279_v9 = vadd.f32 %v6514_v33, %v5273_v4 }
 0x611   :  { %11638 = vtanh.f32 %v11278_v15 }
 0x612   :  { %11640 = vtanh.f32 %v11275_v22 }
 0x613   :  { %11642 = vtanh.f32 %v11279_v9 }
 0x616   :  { %v11629_v62 = vpop.eup %11628 }
 0x617   :  { %v11631_v29 = vpop.eup %11630  ;;  %v6572_v42 = vand.u32 4294901760, %v11629_v62 }
 0x618   :  { %v11633_v24 = vpop.eup %11632  ;;  %v7186_v0 = vand.u32 4294901760, %v11631_v29 }
 0x619   :  { %v11635_v48 = vpop.eup %11634  ;;  %v6569_v60 = vand.u32 4294901760, %v11633_v24  ;;  %v12915_v55 = vsub.f32 %v11629_v62, %v6572_v42 }
 0x61a   :  { %v11637_v36 = vpop.eup %11636  ;;  %v7183_v40 = vand.u32 4294901760, %v11635_v48  ;;  %v12917_v49 = vsub.f32 %v11631_v29, %v7186_v0 }
 0x61b   :  { %v11639_v27 = vpop.eup %11638  ;;  %v12923_v19 = vpack.c.bf16 %v6572_v42, %v6569_v60  ;;  %v6578_v2 = vand.u32 4294901760, %v11637_v36  ;;  %v6679_v59 = vsub.f32 %v11633_v24, %v6569_v60  ;;  %v6687_v26 = vand.u32 4294901760, %v12915_v55 }
 0x61c   :  { %v11641_v28 = vpop.eup %11640  ;;  %v12926_v7 = vpack.c.bf16 %v7186_v0, %v7183_v40  ;;  %v7192_v52 = vand.u32 4294901760, %v11639_v27  ;;  %v7293_v31 = vsub.f32 %v11635_v48, %v7183_v40  ;;  %v7301_v32 = vand.u32 4294901760, %v12917_v49 }
 0x61d   :  { %v11643_v23 = vpop.eup %11642  ;;  %v6575_v46 = vand.u32 4294901760, %v11641_v28  ;;  %11073 = vmatprep.subr.bf16.mxu0 %v12923_v19  ;;  %v6680_v61 = vand.u32 4294901760, %v6679_v59  ;;  %v6688_v8 = vsub.f32 %v12915_v55, %v6687_v26  ;;  %v6700_v10 = vsub.f32 %v11637_v36, %v6578_v2 }
 0x61e   :  { %v7189_v30 = vand.u32 4294901760, %v11643_v23  ;;  %11121 = vmatprep.subr.bf16.mxu1 %v12926_v7  ;;  %11075 = vmatpush3.bf16.msra.mxu0 %v12923_v19  ;;  %v7294_v4 = vand.u32 4294901760, %v7293_v31  ;;  %v7302_v54 = vsub.f32 %v12917_v49, %v7301_v32  ;;  %v7314_v25 = vsub.f32 %v11639_v27, %v7192_v52 }
 0x61f   :  { %v12934_v58 = vpack.c.bf16 %v6578_v2, %v6575_v46  ;;  %11123 = vmatpush3.bf16.msra.mxu1 %v12926_v7  ;;  %v6681_v39 = vsub.f32 %v6679_v59, %v6680_v61  ;;  %v6689_v16 = vand.u32 4294901760, %v6688_v8  ;;  %v6693_v12 = vsub.f32 %v11641_v28, %v6575_v46 }
 0x620   :  { %v12937_v15 = vpack.c.bf16 %v7192_v52, %v7189_v30  ;;  %v7295_v22 = vsub.f32 %v7293_v31, %v7294_v4  ;;  %v7303_v33 = vand.u32 4294901760, %v7302_v54  ;;  %v6701_v9 = vand.u32 4294901760, %v6700_v10 }
 0x621   :  { %11077 = vmatprep.subr.bf16.mxu0 %v12934_v58  ;;  %v6682_v13 = vand.u32 4294901760, %v6681_v39  ;;  %v6694_v62 = vand.u32 4294901760, %v6693_v12  ;;  %v7307_v17 = vsub.f32 %v11643_v23, %v7189_v30  ;;  %v7315_v50 = vand.u32 4294901760, %v7314_v25 }
 0x622   :  { %11125 = vmatprep.subr.bf16.mxu1 %v12937_v15  ;;  %11079 = vmatpush3.bf16.msra.mxu0 %v12934_v58  ;;  %v7296_v29 = vand.u32 4294901760, %v7295_v22  ;;  %v6702_v42 = vsub.f32 %v6700_v10, %v6701_v9  ;;  %v11088_v24 = vpack.c.bf16 %v12915_v55, %v6679_v59  ;;  %v11136_v0 = vpack.c.bf16 %v12917_v49, %v7293_v31 }
 0x623   :  { %11127 = vmatpush3.bf16.msra.mxu1 %v12937_v15  ;;  %v11080_v48 = vpack.c.bf16 %v6689_v16, %v6682_v13  ;;  %v6695_v60 = vsub.f32 %v6693_v12, %v6694_v62  ;;  %v7308_v36 = vand.u32 4294901760, %v7307_v17  ;;  %v7316_v40 = vsub.f32 %v7314_v25, %v7315_v50 }
 0x624   :  { %v11128_v27 = vpack.c.bf16 %v7303_v33, %v7296_v29  ;;  %v6703_v2 = vand.u32 4294901760, %v6702_v42  ;;  %v11092_v28 = vpack.c.bf16 %v6700_v10, %v6693_v12  ;;  %v11140_v52 = vpack.c.bf16 %v7314_v25, %v7307_v17 }
 0x625   :  { %10301 = vmatmul.mubr.f32.vlgmr.msra.gmra.mrb[20].mxu0 %v12913_v35  ;;  %11081 = vmatprep.subr.bf16.mxu0 %v11080_v48  ;;  %v6696_v23 = vand.u32 4294901760, %v6695_v60  ;;  %v7309_v46 = vsub.f32 %v7307_v17, %v7308_v36  ;;  %v7317_v8 = vand.u32 4294901760, %v7316_v40  ;;  %v11104_v30 = vpack.c.bf16 %v6687_v26, %v6680_v61 }
 0x626   :  { %10385 = vmatmul.mubr.f32.vlgmr.msra.gmra.mrb[20].mxu1 %v12913_v35  ;;  %11129 = vmatprep.subr.bf16.mxu1 %v11128_v27  ;;  %v11152_v55 = vpack.c.bf16 %v7301_v32, %v7294_v4  ;;  %v11108_v49 = vpack.c.bf16 %v6701_v9, %v6694_v62  ;;  %v11156_v59 = vpack.c.bf16 %v7315_v50, %v7308_v36 }
 0x627   :  { %11083 = vmatpush3.bf16.msra.mxu0 %v11080_v48  ;;  %11131 = vmatpush3.bf16.msra.mxu1 %v11128_v27  ;;  %v11084_v31 = vpack.c.bf16 %v6703_v2, %v6696_v23  ;;  %v7310_v54 = vand.u32 4294901760, %v7309_v46 }
 0x628   :  { %10303 = vmatprep.mubr.f32.mxu0 %v12919_v3  ;;  %10387 = vmatprep.mubr.f32.mxu1 %v12919_v3 }
 0x629   :  { %10304 = vmatmul.mubr.f32.gmra.mrb[22].mxu0 %v12921_v38  ;;  %11085 = vmatprep.subr.bf16.mxu0 %v11084_v31  ;;  %v11132_v10 = vpack.c.bf16 %v7317_v8, %v7310_v54 }
 0x62a   :  { %10388 = vmatmul.mubr.f32.gmra.mrb[22].mxu1 %v12921_v38  ;;  %10314 = vmatprep.mubr.f32.mxu0 %v12861_v56 }
 0x62b   :  { %11133 = vmatprep.subr.bf16.mxu1 %v11132_v10  ;;  %11087 = vmatpush3.bf16.msra.mxu0 %v11084_v31 }
 0x62c   :  { %11135 = vmatpush3.bf16.msra.mxu1 %v11132_v10  ;;  %11089 = vmatprep.subr.bf16.mxu0 %v11088_v24 }
 0x62d   :  { %11137 = vmatprep.subr.bf16.mxu1 %v11136_v0  ;;  %10398 = vmatprep.mubr.f32.mxu1 %v12861_v56 }
 0x62e   :  { %10315 = vmatmul.mubr.f32.vlgmr.msra.gmra.mrb[20].mxu0 %v12883_v43 }
 0x62f   :  { %10399 = vmatmul.mubr.f32.vlgmr.msra.gmra.mrb[20].mxu1 %v12883_v43  ;;  %11091 = vmatpush3.bf16.msra.mxu0 %v11088_v24 }
 0x630   :  { %11139 = vmatpush3.bf16.msra.mxu1 %v11136_v0  ;;  %11093 = vmatprep.subr.bf16.mxu0 %v11092_v28 }
 0x631   :  { %11141 = vmatprep.subr.bf16.mxu1 %v11140_v52  ;;  %10317 = vmatprep.mubr.f32.mxu0 %v12885_v1 }
 0x632   :  { %10401 = vmatprep.mubr.f32.mxu1 %v12885_v1  ;;  %10318 = vmatmul.mubr.f32.gmra.mrb[22].mxu0 %v12887_v5 }
 0x633   :  { %10402 = vmatmul.mubr.f32.gmra.mrb[22].mxu1 %v12887_v5  ;;  %11095 = vmatpush3.bf16.msra.mxu0 %v11092_v28 }
 0x634   :  { %11143 = vmatpush3.bf16.msra.mxu1 %v11140_v52  ;;  %11097 = vmatprep.subr.bf16.mxu0 %v12923_v19 }
 0x635   :  { %11145 = vmatprep.subr.bf16.mxu1 %v12926_v7  ;;  %10328 = vmatprep.mubr.f32.mxu0 %v12864_v63 }
 0x636   :  { %10412 = vmatprep.mubr.f32.mxu1 %v12864_v63  ;;  %10329 = vmatmul.mubr.f32.vlgmr.msra.gmra.mrb[20].mxu0 %v12890_v34  ;;  %v11686_v63 = vmov 0.0|0.0  }
 0x637   :  { %10413 = vmatmul.mubr.f32.vlgmr.msra.gmra.mrb[20].mxu1 %v12890_v34  ;;  %11099 = vmatpush3.bf16.msra.mxu0 %v12923_v19 }
 0x638   :  { %11147 = vmatpush3.bf16.msra.mxu1 %v12926_v7  ;;  %11101 = vmatprep.subr.bf16.mxu0 %v12934_v58 }
 0x639   :  { %11149 = vmatprep.subr.bf16.mxu1 %v12937_v15  ;;  %10331 = vmatprep.mubr.f32.mxu0 %v12893_v44 }
 0x63a   :  { %10415 = vmatprep.mubr.f32.mxu1 %v12893_v44  ;;  %10332 = vmatmul.mubr.f32.gmra.mrb[22].mxu0 %v12896_v47 }
 0x63b   :  { %10416 = vmatmul.mubr.f32.gmra.mrb[22].mxu1 %v12896_v47  ;;  %11103 = vmatpush3.bf16.msra.mxu0 %v12934_v58 }
 0x63c   :  { %11151 = vmatpush3.bf16.msra.mxu1 %v12937_v15  ;;  %11105 = vmatprep.subr.bf16.mxu0 %v11104_v30 }
 0x63d   :  { %11153 = vmatprep.subr.bf16.mxu1 %v11152_v55  ;;  %10342 = vmatprep.mubr.f32.mxu0 %v12867_v51 }
 0x63e   :  { %10426 = vmatprep.mubr.f32.mxu1 %v12867_v51  ;;  %10343 = vmatmul.mubr.f32.vlgmr.msra.gmra.mrb[20].mxu0 %v12899_v57  ;;  %v11688_v51 = vmov 0.0  }
 0x63f   :  { %10427 = vmatmul.mubr.f32.vlgmr.msra.gmra.mrb[20].mxu1 %v12899_v57  ;;  %11107 = vmatpush3.bf16.msra.mxu0 %v11104_v30 }
 0x640   :  { %11155 = vmatpush3.bf16.msra.mxu1 %v11152_v55  ;;  %11109 = vmatprep.subr.bf16.mxu0 %v11108_v49 }
 0x641   :  { %11157 = vmatprep.subr.bf16.mxu1 %v11156_v59  ;;  %10345 = vmatprep.mubr.f32.mxu0 %v12902_v21 }
 0x642   :  { %10429 = vmatprep.mubr.f32.mxu1 %v12902_v21  ;;  %10346 = vmatmul.mubr.f32.gmra.mrb[22].mxu0 %v12905_v45 }
 0x643   :  { %10430 = vmatmul.mubr.f32.gmra.mrb[22].mxu1 %v12905_v45  ;;  %11111 = vmatpush3.bf16.msra.mxu0 %v11108_v49 }
 0x644   :  { %11159 = vmatpush3.bf16.msra.mxu1 %v11156_v59  ;;  %11113 = vmatprep.subr.bf16.mxu0 %v12923_v19 }
 0x645   :  { %11161 = vmatprep.subr.bf16.mxu1 %v12926_v7  ;;  %10356 = vmatprep.mubr.f32.mxu0 %v12861_v56 }
 0x646   :  { %10440 = vmatprep.mubr.f32.mxu1 %v12861_v56  ;;  %10357 = vmatmul.mubr.f32.vlgmr.msra.gmra.mrb[20].mxu0 %v12883_v43 }
 0x647   :  { %10441 = vmatmul.mubr.f32.vlgmr.msra.gmra.mrb[20].mxu1 %v12883_v43  ;;  %11115 = vmatpush3.bf16.msra.mxu0 %v12923_v19 }
 0x648   :  { %11163 = vmatpush3.bf16.msra.mxu1 %v12926_v7  ;;  %11117 = vmatprep.subr.bf16.mxu0 %v12934_v58 }
 0x649   :  { %11165 = vmatprep.subr.bf16.mxu1 %v12937_v15  ;;  %10359 = vmatprep.mubr.f32.mxu0 %v12885_v1 }
 0x64a   :  { %10443 = vmatprep.mubr.f32.mxu1 %v12885_v1  ;;  %10360 = vmatmul.mubr.f32.gmra.mrb[22].mxu0 %v12887_v5 }
 0x64b   :  { %10444 = vmatmul.mubr.f32.gmra.mrb[22].mxu1 %v12887_v5  ;;  %11119 = vmatpush3.bf16.msra.mxu0 %v12934_v58 }
 0x64c   :  { %11167 = vmatpush3.bf16.msra.mxu1 %v12937_v15  ;;  %10370 = vmatprep.mubr.f32.mxu0 %v12861_v56 }
 0x64d   :  { %10454 = vmatprep.mubr.f32.mxu1 %v12861_v56  ;;  %11168 = vmatprep.subr.bf16.mxu0 %v11686_v63  ;;  %v6539_v56 = vpop.permute.xlu0 %6538 }
 0x64e   :  { %10371 = vmatmul.mubr.f32.vlgmr.msra.gmra.mrb[20].mxu0 %v12883_v43  ;;  %11204 = vmatprep.subr.bf16.mxu1 %v11686_v63 }
 0x64f   :  { %10455 = vmatmul.mubr.f32.vlgmr.msra.gmra.mrb[20].mxu1 %v12883_v43  ;;  %10373 = vmatprep.mubr.f32.mxu0 %v12885_v1  ;;  %v7812_v43 = vld [vmem:[%s13150_s1 + $0xe0] sm:$0x1]  ;;  %s11689_s1 = smov [#allocation2]  }
 0x650   :  { %10457 = vmatprep.mubr.f32.mxu1 %v12885_v1  ;;  %v6544_v1 = vpop.permute.xlu1 %6543  ;;  %v7820_v34 = vsel %vm159_vm0, %v7812_v43, 0  ;;  %s8804_s24 = sshll.u32 %s11689_s1, 4  ;;  %s8805_s24 = int_to_ptr.vmem [resolvable:$true] %s8804_s24 }
 0x651   :  { %v6549_v3 = vpop.permute.xlu0 %6548  ;;  %v13018_v26 = vand.u32 4294901760, %v7820_v34  ;;  %s11660_s25 = scalar_lea.vmem %s8805_s24, 32  ;;  %p11665_p1 = scmp.lt.s32.totalorder %s8805_s24, %s8805_s24 }
 0x652   :  { %10374 = vmatmul.mubr.f32.gmra.mrb[22].mxu0 %v12887_v5  ;;  %p11661_p0 = scmp.ne.s32.totalorder %s8805_s24, %s11660_s25  ;;  %p11666_p2 = scmp.lt.s32.totalorder %s11660_s25, %s11660_s25 }
 0x653   :  { %10458 = vmatmul.mubr.f32.gmra.mrb[22].mxu1 %v12887_v5  ;;  %10468 = vmatprep.mubr.msk.f32.mxu0 %vm11687_vm1, %v11688_v51  ;;  %v13025_v9 = vsub.f32 %v7820_v34, %v13018_v26 }
 0x654   :  { %10534 = vmatprep.mubr.msk.f32.mxu1 %vm11687_vm1, %v11688_v51  ;;  %v6554_v7 = vpop.permute.xlu1 %6553  ;;  %p11667_p3 = por %p11666_p2, %p11665_p1 }
 0x655   :  { %v13031_v13 = vand.u32 4294901760, %v13025_v9 }
 0x656   :  { %p11668_p4 = pnand %p11667_p3, %p11661_p0 }
 0x721   :  { %v10372_v5 = vpop.f32.mrb[20].mxu0 }
 0x722   :  { %v11280_v44 = vadd.f32 %v10372_v5, %v6544_v1  ;;  %v10456_v47 = vpop.f32.mrb[20].mxu1  ;;  %v7160_v57 = vpop.f32.mrb[21].mxu0 }
 0x723   :  { %v11284_v21 = vadd.f32 %v10456_v47, %v6544_v1  ;;  %v11281_v45 = vadd.f32 %v7160_v57, %v6539_v56  ;;  %v7774_v35 = vpop.f32.mrb[21].mxu1 }
 0x724   :  { %v7797_v38 = vadd.f32 %v12671_v14, %v11280_v44  ;;  %v11285_v19 = vadd.f32 %v7774_v35, %v6539_v56 }
 0x725   :  { %v7805_v32 = vadd.f32 %v12679_v18, %v11284_v21  ;;  %v7796_v61 = vadd.f32 %v12682_v11, %v11281_v45  ;;  %v10375_v4 = vpop.f32.mrb[22].mxu0 }
 0x726   :  { %11644 = vtanh.f32 %v7797_v38  ;;  %v7804_v25 = vadd.f32 %v12685_v37, %v11285_v19  ;;  %v11282_v58 = vadd.f32 %v10375_v4, %v6554_v7  ;;  %v10459_v39 = vpop.f32.mrb[22].mxu1  ;;  %v7172_v16 = vpop.f32.mrb[23].mxu0 }
 0x727   :  { %11646 = vtanh.f32 %v7805_v32  ;;  %v11286_v12 = vadd.f32 %v10459_v39, %v6554_v7  ;;  %v11283_v15 = vadd.f32 %v7172_v16, %v6549_v3  ;;  %v7786_v22 = vpop.f32.mrb[23].mxu1 }
 0x728   :  { %11648 = vtanh.f32 %v7796_v61  ;;  %v7799_v14 = vadd.f32 %v12691_v20, %v11282_v58  ;;  %v11287_v33 = vadd.f32 %v7786_v22, %v6549_v3  ;;  %v7894_v20 = vsub.f32 %v13025_v9, %v13031_v13 }
 0x729   :  { %11650 = vtanh.f32 %v7804_v25  ;;  %v7807_v18 = vadd.f32 %v12701_v41, %v11286_v12  ;;  %v7798_v11 = vadd.f32 %v12710_v53, %v11283_v15 }
 0x72a   :  { %11652 = vtanh.f32 %v7799_v14  ;;  %v7806_v37 = vadd.f32 %v12719_v6, %v11287_v33  ;;  %v7895_v60 = vand.u32 4294901760, %v7894_v20 }
 0x72b   :  { %11654 = vtanh.f32 %v7807_v18 }
 0x72c   :  { %11656 = vtanh.f32 %v7798_v11 }
 0x72d   :  { %11658 = vtanh.f32 %v7806_v37 }
 0x730   :  { %v11645_v62 = vpop.eup %11644 }
 0x731   :  { %v11647_v17 = vpop.eup %11646  ;;  %v7826_v50 = vand.u32 4294901760, %v11645_v62 }
 0x732   :  { %v11649_v29 = vpop.eup %11648  ;;  %v8316_v42 = vand.u32 4294901760, %v11647_v17 }
 0x733   :  { %v11651_v41 = vpop.eup %11650  ;;  %v7823_v24 = vand.u32 4294901760, %v11649_v29  ;;  %v13035_v53 = vsub.f32 %v11645_v62, %v7826_v50 }
 0x734   :  { %v11653_v0 = vpop.eup %11652  ;;  %v8313_v6 = vand.u32 4294901760, %v11651_v41  ;;  %v13037_v48 = vsub.f32 %v11647_v17, %v8316_v42 }
 0x735   :  { %v11655_v36 = vpop.eup %11654  ;;  %v13039_v40 = vpack.c.bf16 %v7826_v50, %v7823_v24  ;;  %v13041_v27 = vsub.f32 %v11649_v29, %v7823_v24  ;;  %v7832_v2 = vand.u32 4294901760, %v11653_v0  ;;  %v7911_v28 = vand.u32 4294901760, %v13035_v53 }
 0x736   :  { %v11657_v52 = vpop.eup %11656  ;;  %v13044_v23 = vpack.c.bf16 %v8316_v42, %v8313_v6  ;;  %v13046_v46 = vsub.f32 %v11651_v41, %v8313_v6  ;;  %v8322_v8 = vand.u32 4294901760, %v11655_v36  ;;  %v8401_v30 = vand.u32 4294901760, %v13037_v48 }
 0x737   :  { %v11659_v55 = vpop.eup %11658  ;;  %11170 = vmatpush3.bf16.msra.mxu0 %v13039_v40  ;;  %v7829_v49 = vand.u32 4294901760, %v11657_v52  ;;  %v13050_v59 = vsub.f32 %v11653_v0, %v7832_v2  ;;  %v7904_v31 = vand.u32 4294901760, %v13041_v27  ;;  %v7912_v54 = vsub.f32 %v13035_v53, %v7911_v28 }
 0x738   :  { %11206 = vmatpush3.bf16.msra.mxu1 %v13044_v23  ;;  %11171 = vmatprep.subr.bf16.mxu0 %v11686_v63  ;;  %v8319_v10 = vand.u32 4294901760, %v11659_v55  ;;  %v13056_v56 = vsub.f32 %v11655_v36, %v8322_v8  ;;  %v8394_v43 = vand.u32 4294901760, %v13046_v46  ;;  %v8402_v1 = vsub.f32 %v13037_v48, %v8401_v30 }
 0x739   :  { %11207 = vmatprep.subr.bf16.mxu1 %v11686_v63  ;;  %v13061_v5 = vpack.c.bf16 %v7832_v2, %v7829_v49  ;;  %v7917_v34 = vsub.f32 %v11657_v52, %v7829_v49  ;;  %v7905_v44 = vsub.f32 %v13041_v27, %v7904_v31  ;;  %v7913_v47 = vand.u32 4294901760, %v7912_v54 }
 0x73a   :  { %v13064_v57 = vpack.c.bf16 %v8322_v8, %v8319_v10  ;;  %v8407_v21 = vsub.f32 %v11659_v55, %v8319_v10  ;;  %v8395_v45 = vsub.f32 %v13046_v46, %v8394_v43  ;;  %v8403_v35 = vand.u32 4294901760, %v8402_v1 }
 0x73b   :  { %11173 = vmatpush3.bf16.msra.mxu0 %v13061_v5  ;;  %v7906_v3 = vand.u32 4294901760, %v7905_v44  ;;  %v7918_v38 = vand.u32 4294901760, %v7917_v34  ;;  %v7925_v19 = vand.u32 4294901760, %v13050_v59  ;;  %v8415_v7 = vand.u32 4294901760, %v13056_v56 }
 0x73c   :  { %11209 = vmatpush3.bf16.msra.mxu1 %v13064_v57  ;;  %11174 = vmatprep.subr.bf16.mxu0 %v11686_v63  ;;  %v8396_v32 = vand.u32 4294901760, %v8395_v45  ;;  %v8408_v61 = vand.u32 4294901760, %v8407_v21  ;;  %v11181_v4 = vpack.c.bf16 %v13035_v53, %v13041_v27  ;;  %v11217_v25 = vpack.c.bf16 %v13037_v48, %v13046_v46 }
 0x73d   :  { %11210 = vmatprep.subr.bf16.mxu1 %v11686_v63  ;;  %v11175_v58 = vpack.c.bf16 %v7913_v47, %v7906_v3  ;;  %v7919_v39 = vsub.f32 %v7917_v34, %v7918_v38  ;;  %v7926_v16 = vsub.f32 %v13050_v59, %v7925_v19  ;;  %v8416_v12 = vsub.f32 %v13056_v56, %v8415_v7 }
 0x73e   :  { %10469 = vmatmul.mubr.f32.vlgmr.msra.gmra.mrb[24].mxu0 %v7895_v60  ;;  %v11211_v15 = vpack.c.bf16 %v8403_v35, %v8396_v32  ;;  %v8409_v22 = vsub.f32 %v8407_v21, %v8408_v61  ;;  %v11184_v14 = vpack.c.bf16 %v13050_v59, %v7917_v34  ;;  %v11220_v33 = vpack.c.bf16 %v13056_v56, %v8407_v21 }
 0x73f   :  { %10535 = vmatmul.mubr.f32.vlgmr.msra.gmra.mrb[24].mxu1 %v7895_v60  ;;  %11176 = vmatpush3.bf16.msra.mxu0 %v11175_v58  ;;  %v7920_v18 = vand.u32 4294901760, %v7919_v39  ;;  %v7927_v11 = vand.u32 4294901760, %v7926_v16  ;;  %v8417_v37 = vand.u32 4294901760, %v8416_v12  ;;  %v11193_v62 = vpack.c.bf16 %v7911_v28, %v7904_v31 }
 0x740   :  { %11212 = vmatpush3.bf16.msra.mxu1 %v11211_v15  ;;  %11177 = vmatprep.subr.bf16.mxu0 %v11686_v63  ;;  %v8410_v20 = vand.u32 4294901760, %v8409_v22  ;;  %v11229_v17 = vpack.c.bf16 %v8401_v30, %v8394_v43  ;;  %v11196_v50 = vpack.c.bf16 %v7925_v19, %v7918_v38  ;;  %v11232_v29 = vpack.c.bf16 %v8415_v7, %v8408_v61 }
 0x741   :  { %11213 = vmatprep.subr.bf16.mxu1 %v11686_v63  ;;  %v11178_v42 = vpack.c.bf16 %v7927_v11, %v7920_v18  ;;  %10479 = vmatprep.mubr.msk.f32.mxu0 %vm11687_vm1, %v11688_v51 }
 0x742   :  { %v11214_v41 = vpack.c.bf16 %v8417_v37, %v8410_v20  ;;  %10545 = vmatprep.mubr.msk.f32.mxu1 %vm11687_vm1, %v11688_v51 }
 0x743   :  { %11179 = vmatpush3.bf16.msra.mxu0 %v11178_v42 }
 0x744   :  { %11215 = vmatpush3.bf16.msra.mxu1 %v11214_v41  ;;  %11180 = vmatprep.subr.bf16.mxu0 %v11686_v63 }
 0x745   :  { %11216 = vmatprep.subr.bf16.mxu1 %v11686_v63 }
 0x746   :  { %10480 = vmatmul.mubr.f32.vlgmr.msra.gmra.mrb[24].mxu0 %v13018_v26 }
 0x747   :  { %10546 = vmatmul.mubr.f32.vlgmr.msra.gmra.mrb[24].mxu1 %v13018_v26  ;;  %11182 = vmatpush3.bf16.msra.mxu0 %v11181_v4 }
 0x748   :  { %11218 = vmatpush3.bf16.msra.mxu1 %v11217_v25  ;;  %11183 = vmatprep.subr.bf16.mxu0 %v11686_v63 }
 0x749   :  { %11219 = vmatprep.subr.bf16.mxu1 %v11686_v63  ;;  %10490 = vmatprep.mubr.msk.f32.mxu0 %vm11687_vm1, %v11688_v51 }
 0x74a   :  { %10556 = vmatprep.mubr.msk.f32.mxu1 %vm11687_vm1, %v11688_v51 }
 0x74b   :  { %11185 = vmatpush3.bf16.msra.mxu0 %v11184_v14 }
 0x74c   :  { %11221 = vmatpush3.bf16.msra.mxu1 %v11220_v33  ;;  %11186 = vmatprep.subr.bf16.mxu0 %v11686_v63 }
 0x74d   :  { %11222 = vmatprep.subr.bf16.mxu1 %v11686_v63 }
 0x74e   :  { %10491 = vmatmul.mubr.f32.vlgmr.msra.gmra.mrb[24].mxu0 %v13025_v9 }
 0x74f   :  { %10557 = vmatmul.mubr.f32.vlgmr.msra.gmra.mrb[24].mxu1 %v13025_v9  ;;  %11188 = vmatpush3.bf16.msra.mxu0 %v13039_v40  ;;  %v8307_v9 = vlaneseq }
 0x750   :  { %11224 = vmatpush3.bf16.msra.mxu1 %v13044_v23  ;;  %11189 = vmatprep.subr.bf16.mxu0 %v11686_v63 }
 0x751   :  { %11225 = vmatprep.subr.bf16.mxu1 %v11686_v63  ;;  %10501 = vmatprep.mubr.msk.f32.mxu0 %vm11687_vm1, %v11688_v51  ;;  %vm8309_vm2 = vcmp.lt.s32.totalorder %v8307_v9, 128 }
 0x752   :  { %10567 = vmatprep.mubr.msk.f32.mxu1 %vm11687_vm1, %v11688_v51 }
 0x753   :  { %11191 = vmatpush3.bf16.msra.mxu0 %v13061_v5 }
 0x754   :  { %11227 = vmatpush3.bf16.msra.mxu1 %v13064_v57  ;;  %11192 = vmatprep.subr.bf16.mxu0 %v11686_v63 }
 0x755   :  { %11228 = vmatprep.subr.bf16.mxu1 %v11686_v63 }
 0x756   :  { %10502 = vmatmul.mubr.f32.vlgmr.msra.gmra.mrb[24].mxu0 %v13031_v13 }
 0x757   :  { %10568 = vmatmul.mubr.f32.vlgmr.msra.gmra.mrb[24].mxu1 %v13031_v13  ;;  %11194 = vmatpush3.bf16.msra.mxu0 %v11193_v62  ;;  %v7817_v13 = vpop.permute.xlu0 %7816 }
 0x758   :  { %11230 = vmatpush3.bf16.msra.mxu1 %v11229_v17  ;;  %11195 = vmatprep.subr.bf16.mxu0 %v11686_v63 }
 0x759   :  { %11231 = vmatprep.subr.bf16.mxu1 %v11686_v63  ;;  %10512 = vmatprep.mubr.msk.f32.mxu0 %vm11687_vm1, %v11688_v51 }
 0x75a   :  { %10578 = vmatprep.mubr.msk.f32.mxu1 %vm11687_vm1, %v11688_v51 }
 0x75b   :  { %11197 = vmatpush3.bf16.msra.mxu0 %v11196_v50 }
 0x75c   :  { %11233 = vmatpush3.bf16.msra.mxu1 %v11232_v29  ;;  %11198 = vmatprep.subr.bf16.mxu0 %v11686_v63 }
 0x75d   :  { %11234 = vmatprep.subr.bf16.mxu1 %v11686_v63 }
 0x75e   :  { %10513 = vmatmul.mubr.f32.vlgmr.msra.gmra.mrb[24].mxu0 %v13018_v26 }
 0x75f   :  { %10579 = vmatmul.mubr.f32.vlgmr.msra.gmra.mrb[24].mxu1 %v13018_v26  ;;  %11200 = vmatpush3.bf16.msra.mxu0 %v13039_v40 }
 0x760   :  { %11236 = vmatpush3.bf16.msra.mxu1 %v13044_v23  ;;  %11201 = vmatprep.subr.bf16.mxu0 %v11686_v63 }
 0x761   :  { %11237 = vmatprep.subr.bf16.mxu1 %v11686_v63  ;;  %10523 = vmatprep.mubr.msk.f32.mxu0 %vm11687_vm1, %v11688_v51 }
 0x762   :  { %10589 = vmatprep.mubr.msk.f32.mxu1 %vm11687_vm1, %v11688_v51 }
 0x763   :  { %11203 = vmatpush3.bf16.msra.mxu0 %v13061_v5 }
 0x764   :  { %11239 = vmatpush3.bf16.msra.mxu1 %v13064_v57 }
 0x766   :  { %10524 = vmatmul.mubr.f32.vlgmr.msra.gmra.mrb[24].mxu0 %v13018_v26 }
 0x767   :  { %10590 = vmatmul.mubr.f32.vlgmr.msra.gmra.mrb[24].mxu1 %v13018_v26 }
 0x839   :  { %v8303_v24 = vpop.f32.mrb[24].mxu0 }
 0x83a   :  { %v11288_v63 = vadd.f32 %v8303_v24, %v7817_v13  ;;  %v8793_v53 = vpop.f32.mrb[24].mxu1  ;;  %v10525_v0 = vpop.f32.mrb[25].mxu0 }
 0x83b   :  { %v11289_v6 = vadd.f32 %v8793_v53, %v7817_v13  ;;  %v10591_v48 = vpop.f32.mrb[25].mxu1 }
 0x83c   :  { %8311 = vst.msk [vmem:[#allocation2] sm:$0x1] %vm8309_vm2, %v11288_v63 }
 0x83d   :  { %8797 = vst.msk [vmem:[#allocation2 + $0x1] sm:$0x1] %vm8309_vm2, %v11289_v6 }
 0x83e   :  { %11671 = shalt.err (!%p11668_p4)
}
 0x83f   :  { %s11672_s28 = scalar_lea.hbm %s13152_s3, 32 }
 0x840   :  { %p11673_p5 = scmp.ne.s32.totalorder %s13152_s3, %s11672_s28  ;;  %p11676_p6 = scmp.lt.u32.totalorder %s11672_s28, %s13152_s3 }
 0x842   :  { %p11678_p7 = pnand %p11676_p6, %p11673_p5 }
 0x844   :  { %11681 = shalt.err (!%p11678_p7)
}
 0x845   :  { %8807 = dma.vmem_to_hbm [thread:$0]  %s8805_s24, 32, %s13152_s3, [#allocation3]  }
 0x846   :  { %11682 = dma.done.wait [#allocation3], 32  }
 0x847   :  { %11683 = vsyncadd [#allocation3], 4294967264 }
 0x848   :  { %8811 = vsyncpa [#allocation3], 1 }

</bundles_post_ra>
